<compile_context>
chip_gen: v7x
topology: tpu7x:2x2x1
jax: 0.10.0
libtpu: 0.0.40
codegen_flags: <defaults>
</compile_context>

<pallas_src>
from functools import partial

import jax
import jax.numpy as jnp
from jax import lax
from jax.experimental import pallas as pl
from jax.experimental.pallas import tpu as pltpu

_EPS = 1e-5


# ----------------------------------------------------------------------------- kernels
def _norm_qkv_rope_kernel(x_ref, g_ref, wqkv_ref, cos_ref, sin_ref,
                          q_ref, k_ref, v_ref, *, nh, nkv, hd, scale):
    """RMSNorm -> fused QKV matmul -> RoPE (q scaled by 1/sqrt(hd))."""
    xt = x_ref[...]                                            # (ts, E) f32
    ms = jnp.mean(xt * xt, axis=-1, keepdims=True)
    xn = (xt * lax.rsqrt(ms + _EPS)) * g_ref[...]              # RMSNorm, f32
    xb = xn.astype(jnp.bfloat16)

    qkv = jnp.dot(xb, wqkv_ref[...],
                  preferred_element_type=jnp.float32)          # (ts, (nh+2*nkv)*hd) f32
    ts = xt.shape[0]
    qd, kd = nh * hd, nkv * hd
    q = qkv[:, :qd].reshape(ts, nh, hd)
    k = qkv[:, qd:qd + kd].reshape(ts, nkv, hd)
    v = qkv[:, qd + kd:].reshape(ts, nkv, hd)

    cos = cos_ref[...][:, None, :]                             # (ts, 1, hd)
    sin = sin_ref[...][:, None, :]                             # sign already folded in

    def rope(t):                                               # rotate-half via XLU roll
        return t * cos + pltpu.roll(t, hd // 2, 2) * sin

    q_ref[...] = (rope(q) * scale).astype(jnp.bfloat16)        # scale folded into q
    k_ref[...] = rope(k).astype(jnp.bfloat16)                  # RoPE once per KV head
    v_ref[...] = v.astype(jnp.bfloat16)


def _flash_attn_kernel(q_ref, k_ref, v_ref, o_ref, m_sc, l_sc, acc_sc, *, tq, tk):
    """Causal flash attention for one (batch, head, q-tile); kv-tile is the reduction axis."""
    qi = pl.program_id(2)
    ki = pl.program_id(3)

    @pl.when(ki == 0)
    def _():
        m_sc[...] = jnp.full_like(m_sc, -jnp.inf)
        l_sc[...] = jnp.zeros_like(l_sc)
        acc_sc[...] = jnp.zeros_like(acc_sc)

    # Skip KV tiles that lie entirely in the causal future of this Q tile.
    @pl.when(ki * tk <= qi * tq + (tq - 1))
    def _():
        s = lax.dot_general(q_ref[...], k_ref[...],
                            (((1,), (1,)), ((), ())),
                            preferred_element_type=jnp.float32)        # (tq, tk) f32
        rows = qi * tq + lax.broadcasted_iota(jnp.int32, (tq, tk), 0)
        cols = ki * tk + lax.broadcasted_iota(jnp.int32, (tq, tk), 1)
        s = jnp.where(cols <= rows, s, -jnp.inf)

        m_prev = m_sc[...]
        m_new = jnp.maximum(m_prev, jnp.max(s, axis=-1, keepdims=True))
        alpha = jnp.exp(m_prev - m_new)
        p = jnp.exp(s - m_new)
        l_sc[...] = alpha * l_sc[...] + jnp.sum(p, axis=-1, keepdims=True)
        acc_sc[...] = alpha * acc_sc[...] + jnp.dot(
            p.astype(jnp.bfloat16), v_ref[...], preferred_element_type=jnp.float32)
        m_sc[...] = m_new

    @pl.when(ki == pl.num_programs(3) - 1)
    def _():
        o_ref[...] = (acc_sc[...] *
                      pl.reciprocal(l_sc[...], approx=True)).astype(o_ref.dtype)


def _attn_out_ffn_kernel(ctx_ref, res_ref, wo_ref, g2_ref, w12_ref, w3_ref,
                         o_ref, *, hidden):
    """out-proj + residual -> RMSNorm2 -> SwiGLU (fused fc1/fc2) -> fc3 -> residual."""
    # attention out-projection (bf16 Linear) + first residual (f32)
    att = jnp.dot(ctx_ref[...], wo_ref[...],
                  preferred_element_type=jnp.float32).astype(jnp.bfloat16)
    h1 = res_ref[...] + att.astype(jnp.float32)                # (tm, E) f32

    # RMSNorm 2 (f32)
    ms = jnp.mean(h1 * h1, axis=-1, keepdims=True)
    xn = (h1 * lax.rsqrt(ms + _EPS)) * g2_ref[...]
    xb = xn.astype(jnp.bfloat16)

    # fused fc1/fc2 matmul + SiLU gate
    h12 = jnp.dot(xb, w12_ref[...],
                  preferred_element_type=jnp.float32)          # (tm, 2H) f32
    a = h12[:, :hidden].astype(jnp.bfloat16).astype(jnp.float32)   # fc1 out (bf16 rounded)
    b = h12[:, hidden:].astype(jnp.bfloat16).astype(jnp.float32)   # fc2 out
    gate = (a * jax.nn.sigmoid(a) * b).astype(jnp.bfloat16)        # (tm, H) bf16

    # fc3 (bf16 Linear) + second residual (f32)
    ff = jnp.dot(gate, w3_ref[...],
                 preferred_element_type=jnp.float32).astype(jnp.bfloat16)
    o_ref[...] = h1 + ff.astype(jnp.float32)


# ----------------------------------------------------------------------------- wrapper
def _tile(dim, target):
    """Largest tile <= target that divides dim (falls back to full dim)."""
    if dim <= target:
        return dim
    return target if dim % target == 0 else dim


def transformer_block(x, params, cos_table, sin_table, n_heads, n_kv_groups):
    B, S, E = x.shape
    NH, NKV = n_heads, n_kv_groups
    HD = E // NH
    GS = NH // NKV
    H = params['fc3_t'].shape[0]
    M = B * S
    f32, bf16 = jnp.float32, jnp.bfloat16

    # Host-side prep: fuse weights, slice RoPE tables, fold rotate-half sign into sin.
    w_qkv = jnp.concatenate([params['wq_t'], params['wk_t'], params['wv_t']], axis=1)
    w_ff12 = jnp.concatenate([params['fc1_t'], params['fc2_t']], axis=1)
    cos = cos_table[:S].astype(f32)                                     # (S, HD)
    sign = jnp.concatenate([-jnp.ones((HD // 2,), f32), jnp.ones((HD // 2,), f32)])
    sin = sin_table[:S].astype(f32) * sign[None, :]                     # sign-folded sin

    ts = _tile(S, 128)       # seq / q tile
    tk = _tile(S, 256)       # kv tile
    tm = _tile(M, 256)       # token tile (flattened B*S)

    def cp(sem):
        return pltpu.CompilerParams(dimension_semantics=sem,
                                    vmem_limit_bytes=32 * 1024 * 1024)

    qkvd = (NH + 2 * NKV) * HD

    # ---- 1) norm1 + fused QKV + RoPE -------------------------------------------------
    q, k, v = pl.pallas_call(
        partial(_norm_qkv_rope_kernel, nh=NH, nkv=NKV, hd=HD, scale=float(HD) ** -0.5),
        grid=(B, S // ts),
        in_specs=[
            pl.BlockSpec((pl.Squeezed(), ts, E), lambda b, si: (b, si, 0)),
            pl.BlockSpec((1, E), lambda b, si: (0, 0)),
            pl.BlockSpec((E, qkvd), lambda b, si: (0, 0)),
            pl.BlockSpec((ts, HD), lambda b, si: (si, 0)),
            pl.BlockSpec((ts, HD), lambda b, si: (si, 0)),
        ],
        out_specs=[
            pl.BlockSpec((pl.Squeezed(), ts, NH, HD), lambda b, si: (b, si, 0, 0)),
            pl.BlockSpec((pl.Squeezed(), ts, NKV, HD), lambda b, si: (b, si, 0, 0)),
            pl.BlockSpec((pl.Squeezed(), ts, NKV, HD), lambda b, si: (b, si, 0, 0)),
        ],
        out_shape=[
            jax.ShapeDtypeStruct((B, S, NH, HD), bf16),
            jax.ShapeDtypeStruct((B, S, NKV, HD), bf16),
            jax.ShapeDtypeStruct((B, S, NKV, HD), bf16),
        ],
        compiler_params=cp(("parallel", "parallel")),
    )(x, params['norm1_w'], w_qkv, cos, sin)

    # ---- 2) flash attention (per batch/head, kv-tile reduction) -----------------------
    ctx = pl.pallas_call(
        partial(_flash_attn_kernel, tq=ts, tk=tk),
        grid=(B, NH, S // ts, S // tk),
        in_specs=[
            pl.BlockSpec((pl.Squeezed(), ts, pl.Squeezed(), HD),
                         lambda b, h, qi, ki: (b, qi, h, 0)),
            pl.BlockSpec((pl.Squeezed(), tk, pl.Squeezed(), HD),
                         lambda b, h, qi, ki: (b, ki, h // GS, 0)),
            pl.BlockSpec((pl.Squeezed(), tk, pl.Squeezed(), HD),
                         lambda b, h, qi, ki: (b, ki, h // GS, 0)),
        ],
        out_specs=pl.BlockSpec((pl.Squeezed(), ts, pl.Squeezed(), HD),
                               lambda b, h, qi, ki: (b, qi, h, 0)),
        out_shape=jax.ShapeDtypeStruct((B, S, NH, HD), bf16),
        scratch_shapes=[pltpu.VMEM((ts, 1), f32),
                        pltpu.VMEM((ts, 1), f32),
                        pltpu.VMEM((ts, HD), f32)],
        compiler_params=cp(("parallel", "parallel", "parallel", "arbitrary")),
    )(q, k, v)

    ctx2 = ctx.reshape(M, E)      # (B,S,NH,HD) -> (B*S, E): contiguous, no transpose
    x2 = x.reshape(M, E)

    # ---- 3) fused out-proj + residual + norm2 + SwiGLU + fc3 + residual ---------------
    out = pl.pallas_call(
        partial(_attn_out_ffn_kernel, hidden=H),
        grid=(M // tm,),
        in_specs=[pl.BlockSpec((tm, E), lambda i: (i, 0)),
                  pl.BlockSpec((tm, E), lambda i: (i, 0)),
                  pl.BlockSpec((E, E), lambda i: (0, 0)),
                  pl.BlockSpec((1, E), lambda i: (0, 0)),
                  pl.BlockSpec((E, 2 * H), lambda i: (0, 0)),
                  pl.BlockSpec((H, E), lambda i: (0, 0))],
        out_specs=pl.BlockSpec((tm, E), lambda i: (i, 0)),
        out_shape=jax.ShapeDtypeStruct((M, E), f32),
        compiler_params=cp(("parallel",)),
    )(ctx2, x2, params['wo_t'], params['norm2_w'], w_ff12, params['fc3_t'])

    return out.reshape(B, S, E)


# ----------------------------------------------------------------------------- helpers
def precompute_rope_params(head_dim, theta_base=10000, context_length=4096, freq_config=None):
    assert head_dim % 2 == 0
    inv_freq = 1.0 / theta_base ** (jnp.arange(0, head_dim, 2)[: head_dim // 2]
                                    .astype(jnp.float32) / head_dim)
    if freq_config is not None:
        low_freq_wavelen = freq_config['original_context_length'] / freq_config['low_freq_factor']
        high_freq_wavelen = freq_config['original_context_length'] / freq_config['high_freq_factor']
        wavelen = 2 * jnp.pi / inv_freq
        inv_freq_llama = jnp.where(wavelen > low_freq_wavelen,
                                   inv_freq / freq_config['factor'], inv_freq)
        smooth_factor = (freq_config['original_context_length'] / wavelen
                         - freq_config['low_freq_factor']) / (
            freq_config['high_freq_factor'] - freq_config['low_freq_factor'])
        smoothed_inv_freq = ((1 - smooth_factor) * (inv_freq / freq_config['factor'])
                             + smooth_factor * inv_freq)
        is_medium = (wavelen <= low_freq_wavelen) & (wavelen >= high_freq_wavelen)
        inv_freq = jnp.where(is_medium, smoothed_inv_freq, inv_freq_llama)
    positions = jnp.arange(context_length).astype(jnp.float32)
    angles = positions[:, None] * inv_freq[None, :]
    angles = jnp.concatenate([angles, angles], axis=1)
    return jnp.cos(angles), jnp.sin(angles)


def init_params(key, emb_dim, hidden_dim, n_heads, n_kv_groups):
    head_dim = emb_dim // n_heads
    kv_dim = n_kv_groups * head_dim
    ks = jax.random.split(key, 7)

    def lin(k, out_dim, in_dim):
        # torch Linear weight is (out, in); store the transpose (in, out) in bf16.
        w = jax.random.normal(k, (out_dim, in_dim), jnp.float32) * (in_dim ** -0.5)
        return w.T.astype(jnp.bfloat16)

    return dict(
        wq_t=lin(ks[0], emb_dim, emb_dim),
        wk_t=lin(ks[1], kv_dim, emb_dim),
        wv_t=lin(ks[2], kv_dim, emb_dim),
        wo_t=lin(ks[3], emb_dim, emb_dim),
        fc1_t=lin(ks[4], hidden_dim, emb_dim),
        fc2_t=lin(ks[5], hidden_dim, emb_dim),
        fc3_t=lin(ks[6], emb_dim, hidden_dim),
        norm1_w=jnp.ones((1, emb_dim), jnp.float32),   # nn.RMSNorm default init
        norm2_w=jnp.ones((1, emb_dim), jnp.float32),
    )


def transformer_block_ref(x, params, cos, sin, n_heads, n_kv_groups):
    """Pure-JAX reference mirroring the torch module (bf16 Linears, f32 norms)."""
    B, S, E = x.shape
    HD = E // n_heads
    GS = n_heads // n_kv_groups

    def mm(a, w):
        return jnp.dot(a, w, preferred_element_type=jnp.float32).astype(jnp.bfloat16)

    def rms(t, w):
        ms = jnp.mean(t * t, axis=-1, keepdims=True)
        return t * lax.rsqrt(ms + _EPS) * w.reshape(1, 1, E)

    def rope(t):                                      # (B, nh, S, HD)
        t32 = t.astype(jnp.float32)
        t1, t2 = t32[..., :HD // 2], t32[..., HD // 2:]
        rot = jnp.concatenate([-t2, t1], axis=-1)
        return (t32 * cos[None, None] + rot * sin[None, None]).astype(t.dtype)

    shortcut = x
    xb = rms(x, params['norm1_w']).astype(jnp.bfloat16).reshape(B * S, E)
    q = mm(xb, params['wq_t']).reshape(B, S, n_heads, HD).transpose(0, 2, 1, 3)
    k = mm(xb, params['wk_t']).reshape(B, S, n_kv_groups, HD).transpose(0, 2, 1, 3)
    v = mm(xb, params['wv_t']).reshape(B, S, n_kv_groups, HD).transpose(0, 2, 1, 3)
    q, k = rope(q), rope(k)
    k = jnp.repeat(k, GS, axis=1)
    v = jnp.repeat(v, GS, axis=1)
    s = jnp.einsum('bhqd,bhkd->bhqk', q, k, preferred_element_type=jnp.float32)
    mask = jnp.tril(jnp.ones((S, S), bool))
    s = jnp.where(mask[None, None], s, -jnp.inf)
    w = jax.nn.softmax(s / (HD ** 0.5), axis=-1)
    ctx = jnp.einsum('bhqk,bhkd->bhqd', w.astype(jnp.bfloat16), v,
                     preferred_element_type=jnp.float32).astype(jnp.bfloat16)
    ctx = ctx.transpose(0, 2, 1, 3).reshape(B * S, E)
    att = mm(ctx, params['wo_t']).reshape(B, S, E)
    x1 = shortcut + att.astype(jnp.float32)

    xb2 = rms(x1, params['norm2_w']).astype(jnp.bfloat16).reshape(B * S, E)
    h1 = mm(xb2, params['fc1_t'])
    h2 = mm(xb2, params['fc2_t'])
    hidden = (jax.nn.silu(h1.astype(jnp.float32)) * h2.astype(jnp.float32)
              ).astype(jnp.bfloat16)
    ff = mm(hidden, params['fc3_t']).reshape(B, S, E)
    return x1 + ff.astype(jnp.float32)


# ----------------------------------------------------------------------------- demo
if __name__ == "__main__":
    cfg = dict(emb_dim=512, hidden_dim=1024, n_heads=4, n_kv_groups=2,
               context_length=64, rope_base=10000, rope_freq=None)
    B, S = 2, 16
    HD = cfg['emb_dim'] // cfg['n_heads']     # 128 -> lane-aligned heads

    key = jax.random.PRNGKey(0)
    k_x, k_p = jax.random.split(key)
    x = jax.random.normal(k_x, (B, S, cfg['emb_dim']), dtype=jnp.float32)
    params = init_params(k_p, cfg['emb_dim'], cfg['hidden_dim'],
                         cfg['n_heads'], cfg['n_kv_groups'])
    cos, sin = precompute_rope_params(HD, cfg['rope_base'],
                                      cfg['context_length'], cfg['rope_freq'])

    out = transformer_block(x, params, cos, sin, cfg['n_heads'], cfg['n_kv_groups'])
    jax.block_until_ready(out)

    assert out.shape == (B, S, cfg['emb_dim']) and out.dtype == jnp.float32
    assert bool(jnp.all(jnp.isfinite(out)))

    ref = transformer_block_ref(x, params, cos[:S].astype(jnp.float32),
                                sin[:S].astype(jnp.float32),
                                cfg['n_heads'], cfg['n_kv_groups'])
    # bf16-level tolerance (kernel folds the softmax scale into q and uses online softmax).
    assert bool(jnp.allclose(out, ref, rtol=1e-1, atol=1e-1)), \
        float(jnp.max(jnp.abs(out - ref)))

    print("KERNEL_OK")
</pallas_src>

<mosaic_0001>
module attributes {stable_mosaic.version = 11 : i64} {
  func.func @_norm_qkv_rope_kernel(%arg0: i32, %arg1: i32, %arg2: memref<1x16x512xf32, #tpu.memory_space<vmem>>, %arg3: memref<1x512xf32, #tpu.memory_space<vmem>>, %arg4: memref<512x1024xbf16, #tpu.memory_space<vmem>>, %arg5: memref<16x128xf32, #tpu.memory_space<vmem>>, %arg6: memref<16x128xf32, #tpu.memory_space<vmem>>, %arg7: memref<1x16x4x128xbf16, #tpu.memory_space<vmem>>, %arg8: memref<1x16x2x128xbf16, #tpu.memory_space<vmem>>, %arg9: memref<1x16x2x128xbf16, #tpu.memory_space<vmem>>) attributes {dimension_semantics = [#tpu.dimension_semantics<parallel>, #tpu.dimension_semantics<parallel>], iteration_bounds = array<i64: 2, 1>, scalar_prefetch = 0 : i64, scratch_operands = 0 : i64, tpu.core_type = #tpu.core_type<tc>, window_params = [{transform_indices = @transform_0, window_bounds = array<i64: 1, 16, 512>}, {pipeline_mode = #tpu.pipeline_mode<synchronous>, transform_indices = @transform_1, window_bounds = array<i64: 1, 512>}, {pipeline_mode = #tpu.pipeline_mode<synchronous>, transform_indices = @transform_2, window_bounds = array<i64: 512, 1024>}, {transform_indices = @transform_3, window_bounds = array<i64: 16, 128>}, {transform_indices = @transform_4, window_bounds = array<i64: 16, 128>}, {transform_indices = @transform_5, window_bounds = array<i64: 1, 16, 4, 128>}, {transform_indices = @transform_6, window_bounds = array<i64: 1, 16, 2, 128>}, {transform_indices = @transform_7, window_bounds = array<i64: 1, 16, 2, 128>}]} {
    %c0 = arith.constant 0 : index
    %c0_0 = arith.constant 0 : index
    %c0_1 = arith.constant 0 : index
    %0 = vector.load %arg2[%c0, %c0_0, %c0_1] : memref<1x16x512xf32, #tpu.memory_space<vmem>>, vector<1x16x512xf32>
    %1 = vector.shape_cast %0 : vector<1x16x512xf32> to vector<16x512xf32>
    %2 = arith.mulf %1, %1 : vector<16x512xf32>
    %cst = arith.constant dense<0.000000e+00> : vector<16xf32>
    %3 = vector.multi_reduction <add>, %2, %cst [1] : vector<16x512xf32> to vector<16xf32>
    %4 = vector.shape_cast %3 : vector<16xf32> to vector<16x1xf32>
    %cst_2 = arith.constant 5.120000e+02 : f32
    %5 = vector.broadcast %cst_2 : f32 to vector<16x1xf32>
    %6 = arith.divf %4, %5 : vector<16x1xf32>
    %cst_3 = arith.constant 9.99999974E-6 : f32
    %7 = vector.broadcast %cst_3 : f32 to vector<16x1xf32>
    %8 = arith.addf %6, %7 : vector<16x1xf32>
    %9 = math.rsqrt %8 : vector<16x1xf32>
    %10 = vector.broadcast %9 : vector<16x1xf32> to vector<16x512xf32>
    %11 = arith.mulf %1, %10 : vector<16x512xf32>
    %c0_4 = arith.constant 0 : index
    %c0_5 = arith.constant 0 : index
    %12 = vector.load %arg3[%c0_4, %c0_5] : memref<1x512xf32, #tpu.memory_space<vmem>>, vector<1x512xf32>
    %13 = vector.broadcast %12 : vector<1x512xf32> to vector<16x512xf32>
    %14 = arith.mulf %11, %13 : vector<16x512xf32>
    %15 = arith.truncf %14 : vector<16x512xf32> to vector<16x512xbf16>
    %c0_6 = arith.constant 0 : index
    %c0_7 = arith.constant 0 : index
    %16 = vector.load %arg4[%c0_6, %c0_7] : memref<512x1024xbf16, #tpu.memory_space<vmem>>, vector<512x1024xbf16>
    %cst_8 = arith.constant dense<0.000000e+00> : vector<16x1024xf32>
    %17 = tpu.matmul %15, %16, %cst_8 {dimension_numbers = #tpu.dot_dimension_numbers<[1], [0], [0], [1], [0, 0, 1, 1], [], []>} : vector<16x512xbf16>, vector<512x1024xbf16>, vector<16x1024xf32> -> vector<16x1024xf32>
    %18 = vector.extract_strided_slice %17 {offsets = [0, 0], sizes = [16, 512], strides = [1, 1]} : vector<16x1024xf32> to vector<16x512xf32>
    %19 = vector.shape_cast %18 : vector<16x512xf32> to vector<16x4x128xf32>
    %20 = vector.extract_strided_slice %17 {offsets = [0, 512], sizes = [16, 256], strides = [1, 1]} : vector<16x1024xf32> to vector<16x256xf32>
    %21 = vector.shape_cast %20 : vector<16x256xf32> to vector<16x2x128xf32>
    %22 = vector.extract_strided_slice %17 {offsets = [0, 768], sizes = [16, 256], strides = [1, 1]} : vector<16x1024xf32> to vector<16x256xf32>
    %23 = vector.shape_cast %22 : vector<16x256xf32> to vector<16x2x128xf32>
    %c0_9 = arith.constant 0 : index
    %c0_10 = arith.constant 0 : index
    %24 = vector.load %arg5[%c0_9, %c0_10] : memref<16x128xf32, #tpu.memory_space<vmem>>, vector<16x128xf32>
    %25 = vector.shape_cast %24 : vector<16x128xf32> to vector<16x1x128xf32>
    %c0_11 = arith.constant 0 : index
    %c0_12 = arith.constant 0 : index
    %26 = vector.load %arg6[%c0_11, %c0_12] : memref<16x128xf32, #tpu.memory_space<vmem>>, vector<16x128xf32>
    %27 = vector.shape_cast %26 : vector<16x128xf32> to vector<16x1x128xf32>
    %28 = vector.broadcast %25 : vector<16x1x128xf32> to vector<16x4x128xf32>
    %29 = arith.mulf %19, %28 : vector<16x4x128xf32>
    %c64_i32 = arith.constant 64 : i32
    %30 = tpu.dynamic_rotate %19 by %c64_i32 dim 2 : vector<16x4x128xf32>, i32 -> vector<16x4x128xf32>
    %31 = vector.broadcast %27 : vector<16x1x128xf32> to vector<16x4x128xf32>
    %32 = arith.mulf %30, %31 : vector<16x4x128xf32>
    %33 = arith.addf %29, %32 : vector<16x4x128xf32>
    %cst_13 = arith.constant 0.0883883461 : f32
    %34 = vector.broadcast %cst_13 : f32 to vector<16x4x128xf32>
    %35 = arith.mulf %33, %34 : vector<16x4x128xf32>
    %36 = arith.truncf %35 : vector<16x4x128xf32> to vector<16x4x128xbf16>
    %c0_14 = arith.constant 0 : index
    %c0_15 = arith.constant 0 : index
    %c0_16 = arith.constant 0 : index
    %c0_17 = arith.constant 0 : index
    %37 = vector.load %arg7[%c0_14, %c0_15, %c0_16, %c0_17] : memref<1x16x4x128xbf16, #tpu.memory_space<vmem>>, vector<1x16x4x128xbf16>
    %38 = vector.shape_cast %37 : vector<1x16x4x128xbf16> to vector<16x4x128xbf16>
    %39 = vector.shape_cast %36 : vector<16x4x128xbf16> to vector<1x16x4x128xbf16>
    tpu.vector_store %arg7[%c0_14, %c0_15, %c0_16, %c0_17], %39 {strides = array<i32>} : memref<1x16x4x128xbf16, #tpu.memory_space<vmem>>, vector<1x16x4x128xbf16>,
    %40 = vector.broadcast %25 : vector<16x1x128xf32> to vector<16x2x128xf32>
    %41 = arith.mulf %21, %40 : vector<16x2x128xf32>
    %c64_i32_18 = arith.constant 64 : i32
    %42 = tpu.dynamic_rotate %21 by %c64_i32_18 dim 2 : vector<16x2x128xf32>, i32 -> vector<16x2x128xf32>
    %43 = vector.broadcast %27 : vector<16x1x128xf32> to vector<16x2x128xf32>
    %44 = arith.mulf %42, %43 : vector<16x2x128xf32>
    %45 = arith.addf %41, %44 : vector<16x2x128xf32>
    %46 = arith.truncf %45 : vector<16x2x128xf32> to vector<16x2x128xbf16>
    %c0_19 = arith.constant 0 : index
    %c0_20 = arith.constant 0 : index
    %c0_21 = arith.constant 0 : index
    %c0_22 = arith.constant 0 : index
    %47 = vector.load %arg8[%c0_19, %c0_20, %c0_21, %c0_22] : memref<1x16x2x128xbf16, #tpu.memory_space<vmem>>, vector<1x16x2x128xbf16>
    %48 = vector.shape_cast %47 : vector<1x16x2x128xbf16> to vector<16x2x128xbf16>
    %49 = vector.shape_cast %46 : vector<16x2x128xbf16> to vector<1x16x2x128xbf16>
    tpu.vector_store %arg8[%c0_19, %c0_20, %c0_21, %c0_22], %49 {strides = array<i32>} : memref<1x16x2x128xbf16, #tpu.memory_space<vmem>>, vector<1x16x2x128xbf16>,
    %50 = arith.truncf %23 : vector<16x2x128xf32> to vector<16x2x128xbf16>
    %c0_23 = arith.constant 0 : index
    %c0_24 = arith.constant 0 : index
    %c0_25 = arith.constant 0 : index
    %c0_26 = arith.constant 0 : index
    %51 = vector.load %arg9[%c0_23, %c0_24, %c0_25, %c0_26] : memref<1x16x2x128xbf16, #tpu.memory_space<vmem>>, vector<1x16x2x128xbf16>
    %52 = vector.shape_cast %51 : vector<1x16x2x128xbf16> to vector<16x2x128xbf16>
    %53 = vector.shape_cast %50 : vector<16x2x128xbf16> to vector<1x16x2x128xbf16>
    tpu.vector_store %arg9[%c0_23, %c0_24, %c0_25, %c0_26], %53 {strides = array<i32>} : memref<1x16x2x128xbf16, #tpu.memory_space<vmem>>, vector<1x16x2x128xbf16>,
    return
  }
  func.func @transform_0(%arg0: i32, %arg1: i32) -> (i32, i32, i32) {
    %c0_i32 = arith.constant 0 : i32
    %c0_i32_0 = arith.constant 0 : i32
    return %arg0, %arg1, %c0_i32 : i32, i32, i32
  }
  func.func @transform_1(%arg0: i32, %arg1: i32) -> (i32, i32) {
    %c0_i32 = arith.constant 0 : i32
    %c0_i32_0 = arith.constant 0 : i32
    %c0_i32_1 = arith.constant 0 : i32
    return %c0_i32, %c0_i32_0 : i32, i32
  }
  func.func @transform_2(%arg0: i32, %arg1: i32) -> (i32, i32) {
    %c0_i32 = arith.constant 0 : i32
    %c0_i32_0 = arith.constant 0 : i32
    %c0_i32_1 = arith.constant 0 : i32
    return %c0_i32, %c0_i32_0 : i32, i32
  }
  func.func @transform_3(%arg0: i32, %arg1: i32) -> (i32, i32) {
    %c0_i32 = arith.constant 0 : i32
    %c0_i32_0 = arith.constant 0 : i32
    return %arg1, %c0_i32 : i32, i32
  }
  func.func @transform_4(%arg0: i32, %arg1: i32) -> (i32, i32) {
    %c0_i32 = arith.constant 0 : i32
    %c0_i32_0 = arith.constant 0 : i32
    return %arg1, %c0_i32 : i32, i32
  }
  func.func @transform_5(%arg0: i32, %arg1: i32) -> (i32, i32, i32, i32) {
    %c0_i32 = arith.constant 0 : i32
    %c0_i32_0 = arith.constant 0 : i32
    %c0_i32_1 = arith.constant 0 : i32
    return %arg0, %arg1, %c0_i32, %c0_i32_0 : i32, i32, i32, i32
  }
  func.func @transform_6(%arg0: i32, %arg1: i32) -> (i32, i32, i32, i32) {
    %c0_i32 = arith.constant 0 : i32
    %c0_i32_0 = arith.constant 0 : i32
    %c0_i32_1 = arith.constant 0 : i32
    return %arg0, %arg1, %c0_i32, %c0_i32_0 : i32, i32, i32, i32
  }
  func.func @transform_7(%arg0: i32, %arg1: i32) -> (i32, i32, i32, i32) {
    %c0_i32 = arith.constant 0 : i32
    %c0_i32_0 = arith.constant 0 : i32
    %c0_i32_1 = arith.constant 0 : i32
    return %arg0, %arg1, %c0_i32, %c0_i32_0 : i32, i32, i32, i32
  }
}

</mosaic_0001>

<bundles_post_ra>
// kernel: tpu_custom_call.1
= control target key start
LH: loop header
LB: loop body
LE: loop exit
PB: predicated region body
PF: predicated region fallthrough
CT: control target
= control target key end

     0   :  { %s5567_s0 = inlined_call_operand.hbm [shape: f32[2,16,512], index: 0, kind: input, shape index: {}]   ;;  %s5568_s1 = inlined_call_operand.hbm [shape: f32[1,512], index: 1, kind: input, shape index: {}]   ;;  %s5569_s2 = inlined_call_operand.hbm [shape: bf16[512,1024], index: 2, kind: input, shape index: {}]   ;;  %s5570_s3 = inlined_call_operand.hbm [shape: f32[16,128], index: 3, kind: input, shape index: {}]   ;;  %s5571_s4 = inlined_call_operand.hbm [shape: f32[16,128], index: 4, kind: input, shape index: {}]   ;;  %s5572_s5 = inlined_call_operand.hbm [shape: bf16[2,16,4,128], index: 5, kind: output, shape index: {0}]   ;;  %s5573_s6 = inlined_call_operand.hbm [shape: bf16[2,16,2,128], index: 6, kind: output, shape index: {1}]   ;;  %s5574_s7 = inlined_call_operand.hbm [shape: bf16[2,16,2,128], index: 7, kind: output, shape index: {2}]  }
   0x1   :  { %5598 = sst [smem:[#allocation35_spill]] %s5568_s1 }
   0x2   :  { %5599 = sst [smem:[#allocation36_spill]] %s5570_s3 }
   0x3   :  { %13 = vsyncpa [#allocation3], 0 }
   0x4   :  { %15 = vsyncpa [#allocation3 + $0x1], 0 }
   0x5   :  { %16 = vsyncpa [#allocation6], 0 }
   0x6   :  { %17 = vsyncpa [#allocation9], 0 }
   0x7   :  { %18 = vsyncpa [#allocation4], 0 }
   0x8   :  { %20 = vsyncpa [#allocation4 + $0x1], 0 }
   0x9   :  { %21 = vsyncpa [#allocation13], 0 }
   0xa   :  { %23 = vsyncpa [#allocation13 + $0x1], 0  ;;  %s4461_s24 = smov 0   ;;  %s4463_s25 = smov 0  }
   0xb   :  { %s4465_s26 = smov 0   ;;  %s4467_s27 = smov 0  }
   0xc   :  { %s4469_s28 = smov 0   ;;  %s4471_s29 = smov 0  }
   0xd LB: > { %s4492_s30 = sadd.s32 4294967295, %s4398_s29   ;;  %s5578_s8 = sadd.s32 4294967294, %s4398_s29   ;;  %s4398_s29 = sphi %s4471_s29, %s29_s29   ;;  %s4394_s28 = sphi %s4469_s28, %s5663_s28   ;;  %s4390_s27 = sphi %s4467_s27, %s5662_s27   ;;  %s4386_s26 = sphi %s4465_s26, %s5661_s26   ;;  %s4382_s25 = sphi %s4463_s25, %s5660_s25   ;;  %s4378_s24 = sphi %s4461_s24, %s5659_s24  }
   0xe   : > { %p63_p0 = scmp.ne.s32.totalorder %s4382_s25, %s4378_s24  ;;  %p5575_p1 = scmp.eq.s32.totalorder %s4492_s30, 0 }
   0xf   : > { %p189_p3 = scmp.eq.s32.totalorder %s5578_s8, 1  ;;  %p3667_p5 = scmp.ge.s32.totalorder %s4398_s29, 1 }
  0x10   : > { %p4503_p4 = por %p5575_p1, %p63_p0  ;;  %p252_p7 = scmp.lt.s32.totalorder %s4398_s29, 3 }
  0x11   : > { %p4508_p6 = por %p189_p3, %p63_p0  ;;  %s4400_s12 = smov [#allocation5]  }
  0x12   : > { %s5600_s9 = scalar_select %p4503_p4, 1, 0 }
  0x13   : > { %s5601_s10 = scalar_select %p4508_p6, 1, 0 }
  0x14   : > { %p4513_p8 = pnand %p3667_p5, %p252_p7  ;;  %s265_s13 = sshll.u32 %s4400_s12, 4  ;;  %s266_s13 = int_to_ptr.vmem [resolvable:$true] %s265_s13 }
  0x15   : > { %5602 = sst [smem:[#allocation20_spill]] %s5601_s10  ;;  %s4401_s14 = smov [#allocation8]  }
  0x16   : > { %s5603_s11 = scalar_select %p4513_p8, 1, 0 }
  0x17   : > { %p3996_p10 = pneg %p4513_p8  ;;  %s291_s15 = sshll.u32 %s4401_s14, 4  ;;  %s4526_s15 = int_to_ptr.vmem [resolvable:$true] %s291_s15 }
  0x18   : > { %s4402_s17 = smov [#allocation7]   ;;  %s5605_s1 = sld [smem:[#allocation35_spill]] }
  0x19   : > { %p4522_p11 = pnand %p3996_p10, %p5575_p1  ;;  %s4528_s18 = sshll.u32 %s4402_s17, 4  ;;  %s276_s18 = int_to_ptr.vmem [resolvable:$true] %s4528_s18 }
  0x1b   : > { %p4538_p13 = pneg %p4522_p11 }
  0x1e   : > { %s4106_s21 = scalar_lea.hbm %s5605_s1, 64 }
  0x1f   : > { %p4107_p12 = scmp.ne.s32.totalorder %s5605_s1, %s4106_s21  ;;  %p4113_p5 = scmp.lt.u32.totalorder %s4106_s21, %s5605_s1 }
  0x21   : > { %p4109_p0 = pnand %p4538_p13, %p4107_p12 }
  0x23   : > { %p4110_p3 = pneg %p4109_p0 }
  0x25   : > { %p4115_p7 = pnand %p4113_p5, %p4110_p3 }
  0x27   : > { %4118 = shalt.err (!%p4115_p7)
}
  0x28   : > { %s4119_s19 = scalar_lea.vmem %s266_s13, 64  ;;  %p4127_p2 = scmp.lt.s32.totalorder %s266_s13, %s266_s13 }
  0x29   : > { %p4120_p10 = scmp.ne.s32.totalorder %s266_s13, %s4119_s19  ;;  %p4128_p6 = scmp.lt.s32.totalorder %s4119_s19, %s4119_s19 }
  0x2b   : > { %p4122_p9 = pnand %p4120_p10, %p4538_p13  ;;  %p4129_p4 = por %p4128_p6, %p4127_p2 }
  0x2d   : > { %p4123_p1 = pneg %p4122_p9 }
  0x2f   : > { %p4130_p8 = pnand %p4129_p4, %p4123_p1 }
  0x31   : > { %4133 = shalt.err (!%p4130_p8)
}
  0x32   : > { %3999 = dma.hbm_to_vmem [thread:$0]  (!%p4522_p11), %s5605_s1, 64, %s266_s13, [#allocation6]  }
  0x33   : > { %s5607_s3 = sld [smem:[#allocation36_spill]] }
  0x39   : > { %s4134_s14 = scalar_lea.hbm %s5607_s3, 256 }
  0x3a   : > { %p4135_p9 = scmp.ne.s32.totalorder %s5607_s3, %s4134_s14  ;;  %p4141_p1 = scmp.lt.u32.totalorder %s4134_s14, %s5607_s3 }
  0x3c   : > { %p4137_p12 = pnand %p4135_p9, %p4538_p13 }
  0x3e   : > { %p4138_p2 = pneg %p4137_p12 }
  0x40   : > { %p4143_p4 = pnand %p4141_p1, %p4138_p2 }
  0x42   : > { %4146 = shalt.err (!%p4143_p4)
}
  0x43   : > { %s4147_s13 = scalar_lea.vmem %s4526_s15, 256  ;;  %p4155_p3 = scmp.lt.s32.totalorder %s4526_s15, %s4526_s15 }
  0x44   : > { %p4148_p6 = scmp.ne.s32.totalorder %s4526_s15, %s4147_s13  ;;  %p4156_p5 = scmp.lt.s32.totalorder %s4147_s13, %s4147_s13 }
  0x46   : > { %p4150_p8 = pnand %p4148_p6, %p4538_p13  ;;  %p4157_p7 = por %p4156_p5, %p4155_p3 }
  0x48   : > { %p4151_p0 = pneg %p4150_p8 }
  0x4a   : > { %p4158_p10 = pnand %p4157_p7, %p4151_p0 }
  0x4c   : > { %4161 = shalt.err (!%p4158_p10)
}
  0x4d   : > { %s5580_s8 = smov 128   ;;  %s5581_s10 = smov 8  }
  0x4e   : > { %4005 = dma.hbm_to_vmem [thread:$0]  (!%p4522_p11), %s5607_s3, 256, %s4526_s15, [#allocation9], %s5580_s8, %s5580_s8, %s5581_s10  }
  0x4f   : > { %s4162_s14 = scalar_lea.hbm %s5569_s2, 32768 }
  0x50   : > { %p4163_p9 = scmp.ne.s32.totalorder %s5569_s2, %s4162_s14  ;;  %p4169_p1 = scmp.lt.u32.totalorder %s4162_s14, %s5569_s2 }
  0x52   : > { %p4165_p12 = pnand %p4163_p9, %p4538_p13 }
  0x54   : > { %p4166_p2 = pneg %p4165_p12 }
  0x56   : > { %p4171_p4 = pnand %p4169_p1, %p4166_p2 }
  0x58   : > { %4174 = shalt.err (!%p4171_p4)
}
  0x59   : > { %s4175_s20 = scalar_lea.vmem %s276_s18, 32768  ;;  %p4183_p3 = scmp.lt.s32.totalorder %s276_s18, %s276_s18 }
  0x5a   : > { %p4176_p6 = scmp.ne.s32.totalorder %s276_s18, %s4175_s20  ;;  %p4184_p5 = scmp.lt.s32.totalorder %s4175_s20, %s4175_s20 }
  0x5c   : > { %p4178_p8 = pnand %p4176_p6, %p4538_p13  ;;  %p4185_p7 = por %p4184_p5, %p4183_p3 }
  0x5e   : > { %p4179_p0 = pneg %p4178_p8 }
  0x60   : > { %p4186_p10 = pnand %p4185_p7, %p4179_p0 }
  0x62   : > { %4189 = shalt.err (!%p4186_p10)
}
  0x63   : > { %s4405_s15 = smov 512   ;;  %s4406_s22 = smov 32  }
  0x64   : > { %4002 = dma.hbm_to_vmem [thread:$0]  (!%p4522_p11), %s5569_s2, 32768, %s276_s18, [#allocation6], %s4405_s15, %s4405_s15, %s4406_s22  }
  0x65   : > { %s4407_s23 = smov [#allocation10]   ;;  %s4190_s13 = scalar_lea.hbm %s5571_s4, 256 }
  0x66   : > { %s307_s14 = sshll.u32 %s4407_s23, 4  ;;  %p4191_p9 = scmp.ne.s32.totalorder %s5571_s4, %s4190_s13  ;;  %s308_s14 = int_to_ptr.vmem [resolvable:$true] %s307_s14 }
  0x67   : > { %p4197_p1 = scmp.lt.u32.totalorder %s4190_s13, %s5571_s4 }
  0x68   : > { %p4193_p12 = pnand %p4191_p9, %p4538_p13 }
  0x6a   : > { %p4194_p2 = pneg %p4193_p12 }
  0x6c   : > { %p4199_p4 = pnand %p4197_p1, %p4194_p2 }
  0x6e   : > { %4202 = shalt.err (!%p4199_p4)
}
  0x6f   : > { %s4203_s18 = scalar_lea.vmem %s308_s14, 256  ;;  %p4211_p3 = scmp.lt.s32.totalorder %s308_s14, %s308_s14 }
  0x70   : > { %p4204_p6 = scmp.ne.s32.totalorder %s308_s14, %s4203_s18  ;;  %p4212_p5 = scmp.lt.s32.totalorder %s4203_s18, %s4203_s18 }
  0x72   : > { %p4206_p8 = pnand %p4204_p6, %p4538_p13  ;;  %p4213_p7 = por %p4212_p5, %p4211_p3 }
  0x74   : > { %p4207_p0 = pneg %p4206_p8 }
  0x76   : > { %p4214_p10 = pnand %p4213_p7, %p4207_p0 }
  0x78   : > { %4217 = shalt.err (!%p4214_p10)
}
  0x79   : > { %s5608_s8 = smov 8   ;;  %s5609_s1 = smov 128  }
  0x7a   : > { %4008 = dma.hbm_to_vmem [thread:$0]  (!%p4522_p11), %s5571_s4, 256, %s308_s14, [#allocation9], %s5609_s1, %s5609_s1, %s5608_s8  }
  0x7b   : > { %s41_s12 = sadd.s32 1, %s4394_s28  ;;  %s50_s16 = sadd.s32 1, %s4386_s26 }
  0x7c   : > { %p43_p13 = scmp.ge.s32.totalorder %s41_s12, 2  ;;  %p57_p9 = scmp.ne.s32.totalorder %s4386_s26, %s4382_s25 }
  0x7d   : > { %p58_p12 = scmp.eq.s32.totalorder %s4398_s29, 0  ;;  %p4027_p2 = scmp.lt.s32.totalorder %s4398_s29, 2 }
  0x7e   : > { %s5665_s12 = smov (%p43_p13, %s41_s12), 0  ;;  %p5610_p4 = scmp.eq.s32.totalorder %s4492_s30, 1 }
  0x7f   : > { %p59_p1 = por %p58_p12, %p57_p9  ;;  %s45_s23 = ssub.s32 %s4394_s28, %s5665_s12 }
  0x80   : > { %p4633_p6 = por %p5610_p4, %p57_p9  ;;  %s321_s17 = sand.u32 1, %s4386_s26  }
  0x81   : > { %p48_p8 = scmp.eq.s32.totalorder %s45_s23, 0  ;;  %s3673_s14 = sshll.u32 %s321_s17, 6 }
  0x82   : > { %s3952_s19 = sshll.u32 %s4394_s28, 10  ;;  %s325_s1 = scalar_lea.vmem [#allocation2], %s3673_s14 }
  0x83   : > { %s4642_s13 = scalar_select %p48_p8, %s4386_s26, %s50_s16  }
  0x84   : > { %s4647_s8 = scalar_lea.hbm %s5567_s0, %s3952_s19  ;;  %s335_s3 = sshll.u32 %s325_s1, 4  ;;  %s4655_s3 = int_to_ptr.vmem [resolvable:$true] %s335_s3 }
  0x85   : > { %p4651_p11 = pnand %p4027_p2, %p59_p1  ;;  %s4657_s16 = scalar_lea.sflag [#allocation3], %s321_s17 }
  0x86   : > { %s4218_s23 = scalar_lea.hbm %s4647_s8, 1024  ;;  %s4223_s20 = scalar_lea.hbm %s5567_s0, 2048 }
  0x87   : > { %p4219_p0 = scmp.ne.s32.totalorder %s4647_s8, %s4218_s23  ;;  %p4220_p3 = pneg %p4651_p11 }
  0x88   : > { %p4224_p10 = scmp.lt.u32.totalorder %s4647_s8, %s5567_s0  ;;  %p4225_p13 = scmp.lt.u32.totalorder %s4223_s20, %s4218_s23 }
  0x89   : > { %p4221_p5 = pnand %p4220_p3, %p4219_p0  ;;  %p4227_p12 = scmp.lt.u32.totalorder %s4218_s23, %s4647_s8 }
  0x8a   : > { %p4226_p9 = por %p4225_p13, %p4224_p10 }
  0x8b   : > { %p4222_p7 = pneg %p4221_p5 }
  0x8c   : > { %p4228_p2 = por %p4227_p12, %p4226_p9 }
  0x8e   : > { %p4229_p1 = pnand %p4228_p2, %p4222_p7 }
  0x90   : > { %4232 = shalt.err (!%p4229_p1)
}
  0x91   : > { %s4233_s17 = scalar_lea.vmem %s4655_s3, 1024  ;;  %s4408_s14 = smov [#allocation2]  }
  0x92   : > { %p4234_p4 = scmp.ne.s32.totalorder %s4655_s3, %s4233_s17  ;;  %s4238_s19 = sshll.u32 %s4408_s14, 4  ;;  %s4239_s19 = int_to_ptr.vmem [resolvable:$false] %s4238_s19 }
  0x93   : > { %s4240_s18 = scalar_lea.vmem %s4239_s19, 2048  ;;  %p4241_p5 = scmp.lt.s32.totalorder %s4655_s3, %s4239_s19 }
  0x94   : > { %p4236_p8 = pnand %p4234_p4, %p4220_p3  ;;  %p4242_p10 = scmp.lt.s32.totalorder %s4240_s18, %s4233_s17 }
  0x96   : > { %p4237_p0 = pneg %p4236_p8  ;;  %p4243_p13 = por %p4242_p10, %p4241_p5 }
  0x98   : > { %p4244_p9 = pnand %p4243_p13, %p4237_p0 }
  0x9a   : > { %4247 = shalt.err (!%p4244_p9)
}
  0x9b   : > { %4012 = dma.hbm_to_vmem [thread:$0]  (!%p4651_p11), %s4647_s8, 1024, %s4655_s3, %s4657_s16, %s4405_s15, %s4405_s15, %s4406_s22  }
  0x9c   : > { %p5613_p3 = scmp.ne.s32.totalorder %s5603_s11, 0 }
  0x9e   : > { %347 = sbr.rel (%p5613_p3) target bundleno = 973 (0x3cd), region = 40 }
  0xa5   : > { %s4691_s23 = sand.u32 1, %s4382_s25   ;;  %p5614_p7 = scmp.ne.s32.totalorder %s5600_s9, 0 }
  0xa6   : > { %s3677_s20 = sshll.u32 %s4691_s23, 6  ;;  %s350_s1 = scalar_lea.sflag [#allocation3], %s4691_s23 }
  0xa7   : > { %s353_s17 = scalar_lea.vmem [#allocation2], %s3677_s20 }
  0xa8   : > { %4357 = dma.done.wait (%p5614_p7), %s350_s1, 1024  }
  0xa9   : > { %4359 = vsyncadd (%p5614_p7), %s350_s1, 4294966272  ;;  %p5615_p12 = scmp.eq.s32.totalorder %s4492_s30, 0 }
  0xab   : > { %4361 = dma.done.wait (%p5615_p12), [#allocation6], 32832   ;;  %p5616_p11 = pmov %p5615_p12 }
  0xad   : > { %4363 = vsyncadd (%p5616_p11), [#allocation6], 4294934464  ;;  %p5617_p2 = pmov %p5616_p11 }
  0xaf   : > { %4365 = dma.done.wait (%p5617_p2), [#allocation9], 512   ;;  %p5618_p1 = pmov %p5617_p2 }
  0xb0   : > { %v4707_v0 = vld [vmem:[%s353_s17] sm:$0xff]  ;;  %v4709_v1 = vld [vmem:[%s353_s17 + $0x8] sm:$0xff]  ;;  %v4711_v2 = vld [vmem:[%s353_s17 + $0x10] sm:$0xff]  ;;  %s4411_s9 = smov 64   ;;  %s3682_s11 = sshll.u32 %s4691_s23, 5 }
  0xb1   : > { %4367 = vsyncadd (%p5618_p1), [#allocation9], 4294966784  ;;  %v4713_v3 = vld [vmem:[%s353_s17 + $0x18] sm:$0xff]  ;;  %v424_v4 = vmul.f32 %v4707_v0, %v4707_v0  ;;  %v425_v5 = vmul.f32 %v4709_v1, %v4709_v1  ;;  %v426_v6 = vmul.f32 %v4711_v2, %v4711_v2  ;;  %v4721_v7 = vld [vmem:[%s353_s17 + $0x20] sm:$0xff]  ;;  %s5116_s15 = scalar_lea.vmem [#allocation11], %s3682_s11  ;;  %s3683_s22 = sshll.u32 %s4691_s23, 4 }
  0xb2   : > { %v4723_v8 = vld [vmem:[%s353_s17 + $0x28] sm:$0xff]  ;;  %v4725_v9 = vld [vmem:[%s353_s17 + $0x30] sm:$0xff]  ;;  %v4727_v10 = vld [vmem:[%s353_s17 + $0x38] sm:$0xff]  ;;  %v428_v11 = vmul.f32 %v4721_v7, %v4721_v7  ;;  %v427_v14 = vmul.f32 %v4713_v3, %v4713_v3  ;;  %s5163_s8 = scalar_lea.vmem [#allocation14], %s3683_s22  ;;  %s3953_s3 = sshll.u32 %s4390_s27, 9 }
  0xb3   : > { %v429_v12 = vmul.f32 %v4723_v8, %v4723_v8  ;;  %v491_v13 = vld [vmem:[#allocation7] sm:$0xff]  ;;  %v432_v15 = vadd.f32 %v425_v5, %v424_v4  ;;  %v430_v16 = vmul.f32 %v4725_v9, %v4725_v9  ;;  %v492_v18 = vld [vmem:[#allocation7 + $0x8] sm:$0xff]  ;;  %v431_v28 = vmul.f32 %v4727_v10, %v4727_v10  ;;  %s3433_s10 = sshll.u32 %s5116_s15, 4  ;;  %s5374_s19 = scalar_lea.hbm %s5572_s5, %s3953_s3  ;;  %s5376_s10 = int_to_ptr.vmem [resolvable:$true] %s3433_s10 }
  0xb4   : > { %v495_v17 = vld [vmem:[#allocation7 + $0x20] sm:$0xff]  ;;  %v496_v19 = vld [vmem:[#allocation7 + $0x28] sm:$0xff]  ;;  %s3408_s18 = scalar_lea.sflag [#allocation4], %s4691_s23  ;;  %s4248_s20 = scalar_lea.vmem %s5376_s10, 512 }
  0xb5   : > { %v437_v20 = vadd.f32 %v429_v12, %v428_v11  ;;  %v3686_v21 = vcombine.high %v491_v13, %v495_v17  ;;  %v3688_v22 = vcombine.high %v492_v18, %v496_v19  ;;  %v3685_v23 = vcombine.low %v491_v13, %v495_v17  ;;  %v499_v24 = vld [vmem:[#allocation7 + $0x40] sm:$0xff]  ;;  %v500_v26 = vld [vmem:[#allocation7 + $0x48] sm:$0xff]  ;;  %p4249_p4 = scmp.ne.s32.totalorder %s5376_s10, %s4248_s20  ;;  %s4414_s1 = smov [#allocation11]  }
  0xb6   : > { %v503_v25 = vld [vmem:[#allocation7 + $0x60] sm:$0xff]  ;;  %v433_v27 = vadd.f32 %v432_v15, %v426_v6  ;;  %v3687_v29 = vcombine.low %v492_v18, %v496_v19  ;;  %v504_v31 = vld [vmem:[#allocation7 + $0x68] sm:$0xff]  ;;  %s4252_s17 = sshll.u32 %s4414_s1, 4  ;;  %s4253_s17 = int_to_ptr.vmem [resolvable:$false] %s4252_s17 }
  0xb7   : > { %v3694_v30 = vcombine.high %v499_v24, %v503_v25  ;;  %v507_v32 = vld [vmem:[#allocation7 + $0x80] sm:$0xff]  ;;  %v438_v34 = vadd.f32 %v437_v20, %v430_v16  ;;  %2027 = vmatprep.subr.bf16.mxu0 %v3686_v21  ;;  %2113 = vmatprep.subr.bf16.mxu1 %v3688_v22  ;;  %v3696_v35 = vcombine.high %v500_v26, %v504_v31  ;;  %v508_v36 = vld [vmem:[#allocation7 + $0x88] sm:$0xff]  ;;  %p4250_p8 = pnand %p4249_p4, %p4633_p6  ;;  %s4254_s11 = scalar_lea.vmem %s4253_s17, 1024 }
  0xb8   : > { %v511_v33 = vld [vmem:[#allocation7 + $0xa0] sm:$0xff]  ;;  %v512_v37 = vld [vmem:[#allocation7 + $0xa8] sm:$0xff]  ;;  %v434_v38 = vadd.f32 %v433_v27, %v427_v14  ;;  %2028 = vmatpush1.bf16.msra.mxu0 %v3685_v23  ;;  %2114 = vmatpush1.bf16.msra.mxu1 %v3687_v29  ;;  %v3693_v39 = vcombine.low %v499_v24, %v503_v25  ;;  %v3695_v40 = vcombine.low %v500_v26, %v504_v31  ;;  %p4255_p5 = scmp.lt.s32.totalorder %s5376_s10, %s4253_s17  ;;  %p4256_p10 = scmp.lt.s32.totalorder %s4254_s11, %s4248_s20 }
  0xb9   : > { %2029 = vmatprep.subr.bf16.mxu0 %v3694_v30  ;;  %2115 = vmatprep.subr.bf16.mxu1 %v3696_v35  ;;  %v3702_v41 = vcombine.high %v507_v32, %v511_v33  ;;  %v3704_v42 = vcombine.high %v508_v36, %v512_v37  ;;  %v515_v43 = vld [vmem:[#allocation7 + $0xc0] sm:$0xff]  ;;  %v439_v44 = vadd.f32 %v438_v34, %v431_v28  ;;  %v516_v46 = vld [vmem:[#allocation7 + $0xc8] sm:$0xff]  ;;  %p4251_p0 = pneg %p4250_p8 }
  0xba   : > { %435 = vadd.xlane.f32.xlu0 %v434_v38  ;;  %v519_v45 = vld [vmem:[#allocation7 + $0xe0] sm:$0xff]  ;;  %v520_v47 = vld [vmem:[#allocation7 + $0xe8] sm:$0xff]  ;;  %v3701_v48 = vcombine.low %v507_v32, %v511_v33  ;;  %v3703_v49 = vcombine.low %v508_v36, %v512_v37  ;;  %v459_v37 = vlaneseq  ;;  %p4257_p13 = por %p4256_p10, %p4255_p5 }
  0xbb   : > { %v3710_v50 = vcombine.high %v515_v43, %v519_v45  ;;  %v3712_v51 = vcombine.high %v516_v46, %v520_v47  ;;  %v523_v52 = vld [vmem:[#allocation7 + $0x100] sm:$0xff]  ;;  %v524_v54 = vld [vmem:[#allocation7 + $0x108] sm:$0xff]  ;;  %v3709_v56 = vcombine.low %v515_v43, %v519_v45  ;;  %v3711_v57 = vcombine.low %v516_v46, %v520_v47 }
  0xbc   : > { %2030 = vmatpush1.bf16.msra.mxu0 %v3693_v39  ;;  %2116 = vmatpush1.bf16.msra.mxu1 %v3695_v40  ;;  %v527_v53 = vld [vmem:[#allocation7 + $0x120] sm:$0xff]  ;;  %v528_v55 = vld [vmem:[#allocation7 + $0x128] sm:$0xff]  ;;  %p4258_p9 = pnand %p4257_p13, %p4251_p0 }
  0xbd   : > { %2031 = vmatprep.subr.bf16.mxu0 %v3702_v41  ;;  %2117 = vmatprep.subr.bf16.mxu1 %v3704_v42  ;;  %v3718_v58 = vcombine.high %v523_v52, %v527_v53  ;;  %v3720_v59 = vcombine.high %v524_v54, %v528_v55  ;;  %v531_v60 = vld [vmem:[#allocation7 + $0x140] sm:$0xff]  ;;  %v532_v62 = vld [vmem:[#allocation7 + $0x148] sm:$0xff]  ;;  %v3717_v4 = vcombine.low %v523_v52, %v527_v53  ;;  %v4739_v41 = vshrl.u32 %v459_v37, 7 }
  0xbe   : > { %440 = vadd.xlane.f32.xlu0 %v439_v44  ;;  %v535_v61 = vld [vmem:[#allocation7 + $0x160] sm:$0xff]  ;;  %v536_v63 = vld [vmem:[#allocation7 + $0x168] sm:$0xff]  ;;  %v3719_v5 = vcombine.low %v524_v54, %v528_v55 }
  0xbf   : > { %v3726_v6 = vcombine.high %v531_v60, %v535_v61  ;;  %v3728_v11 = vcombine.high %v532_v62, %v536_v63  ;;  %v539_v12 = vld [vmem:[#allocation7 + $0x180] sm:$0xff]  ;;  %v540_v14 = vld [vmem:[#allocation7 + $0x188] sm:$0xff]  ;;  %v3725_v16 = vcombine.low %v531_v60, %v535_v61  ;;  %v3727_v17 = vcombine.low %v532_v62, %v536_v63 }
  0xc0   : > { %2032 = vmatpush1.bf16.msra.mxu0 %v3701_v48  ;;  %2118 = vmatpush1.bf16.msra.mxu1 %v3703_v49  ;;  %v543_v13 = vld [vmem:[#allocation7 + $0x1a0] sm:$0xff]  ;;  %v544_v15 = vld [vmem:[#allocation7 + $0x1a8] sm:$0xff] }
  0xc1   : > { %2033 = vmatprep.subr.bf16.mxu0 %v3710_v50  ;;  %2119 = vmatprep.subr.bf16.mxu1 %v3712_v51  ;;  %v3734_v18 = vcombine.high %v539_v12, %v543_v13  ;;  %v3736_v19 = vcombine.high %v540_v14, %v544_v15  ;;  %v547_v20 = vld [vmem:[#allocation7 + $0x1c0] sm:$0xff]  ;;  %v548_v22 = vld [vmem:[#allocation7 + $0x1c8] sm:$0xff]  ;;  %v3733_v24 = vcombine.low %v539_v12, %v543_v13  ;;  %v4741_v50 = vld [vmem:[#allocation5] sm:$0xf]  ;;  %v469_v51 = vsub.s32 2, %v4739_v41 }
  0xc2   : > { %v551_v21 = vld [vmem:[#allocation7 + $0x1e0] sm:$0xff]  ;;  %v552_v23 = vld [vmem:[#allocation7 + $0x1e8] sm:$0xff]  ;;  %v3735_v25 = vcombine.low %v540_v14, %v544_v15 }
  0xc3   : > { %v3742_v26 = vcombine.high %v547_v20, %v551_v21  ;;  %v3744_v27 = vcombine.high %v548_v22, %v552_v23  ;;  %v555_v28 = vld [vmem:[#allocation7 + $0x200] sm:$0xff]  ;;  %v556_v30 = vld [vmem:[#allocation7 + $0x208] sm:$0xff]  ;;  %v3741_v32 = vcombine.low %v547_v20, %v551_v21  ;;  %v3743_v33 = vcombine.low %v548_v22, %v552_v23 }
  0xc4   : > { %2034 = vmatpush1.bf16.msra.mxu0 %v3709_v56  ;;  %2120 = vmatpush1.bf16.msra.mxu1 %v3711_v57  ;;  %v559_v29 = vld [vmem:[#allocation7 + $0x220] sm:$0xff]  ;;  %v560_v31 = vld [vmem:[#allocation7 + $0x228] sm:$0xff]  ;;  %v4745_v54 = vrot.slane %v4741_v50, %v469_v51 }
  0xc5   : > { %2035 = vmatprep.subr.bf16.mxu0 %v3718_v58  ;;  %2121 = vmatprep.subr.bf16.mxu1 %v3720_v59  ;;  %v3750_v34 = vcombine.high %v555_v28, %v559_v29  ;;  %v3752_v35 = vcombine.high %v556_v30, %v560_v31  ;;  %v563_v36 = vld [vmem:[#allocation7 + $0x240] sm:$0xff]  ;;  %v564_v39 = vld [vmem:[#allocation7 + $0x248] sm:$0xff]  ;;  %v3749_v42 = vcombine.low %v555_v28, %v559_v29 }
  0xc6   : > { %v567_v38 = vld [vmem:[#allocation7 + $0x260] sm:$0xff]  ;;  %v568_v40 = vld [vmem:[#allocation7 + $0x268] sm:$0xff]  ;;  %v3751_v43 = vcombine.low %v556_v30, %v560_v31 }
  0xc7   : > { %v3758_v44 = vcombine.high %v563_v36, %v567_v38  ;;  %v3760_v45 = vcombine.high %v564_v39, %v568_v40  ;;  %v571_v46 = vld [vmem:[#allocation7 + $0x280] sm:$0xff]  ;;  %v572_v48 = vld [vmem:[#allocation7 + $0x288] sm:$0xff]  ;;  %v3757_v52 = vcombine.low %v563_v36, %v567_v38  ;;  %v3759_v53 = vcombine.low %v564_v39, %v568_v40 }
  0xc8   : > { %2036 = vmatpush1.bf16.msra.mxu0 %v3717_v4  ;;  %2122 = vmatpush1.bf16.msra.mxu1 %v3719_v5  ;;  %v575_v47 = vld [vmem:[#allocation7 + $0x2a0] sm:$0xff]  ;;  %v576_v49 = vld [vmem:[#allocation7 + $0x2a8] sm:$0xff] }
  0xc9   : > { %2037 = vmatprep.subr.bf16.mxu0 %v3726_v6  ;;  %2123 = vmatprep.subr.bf16.mxu1 %v3728_v11  ;;  %v3766_v55 = vcombine.high %v571_v46, %v575_v47  ;;  %v3768_v56 = vcombine.high %v572_v48, %v576_v49  ;;  %v579_v57 = vld [vmem:[#allocation7 + $0x2c0] sm:$0xff]  ;;  %v580_v59 = vld [vmem:[#allocation7 + $0x2c8] sm:$0xff]  ;;  %v3765_v61 = vcombine.low %v571_v46, %v575_v47 }
  0xca   : > { %v583_v58 = vld [vmem:[#allocation7 + $0x2e0] sm:$0xff]  ;;  %v584_v60 = vld [vmem:[#allocation7 + $0x2e8] sm:$0xff]  ;;  %v3767_v62 = vcombine.low %v572_v48, %v576_v49 }
  0xcb   : > { %v587_v63 = vld [vmem:[#allocation7 + $0x300] sm:$0xff]  ;;  %v3774_v4 = vcombine.high %v579_v57, %v583_v58  ;;  %v3776_v5 = vcombine.high %v580_v59, %v584_v60  ;;  %v588_v11 = vld [vmem:[#allocation7 + $0x308] sm:$0xff] }
  0xcc   : > { %2038 = vmatpush1.bf16.msra.mxu0 %v3725_v16  ;;  %2124 = vmatpush1.bf16.msra.mxu1 %v3727_v17  ;;  %v591_v6 = vld [vmem:[#allocation7 + $0x320] sm:$0xff]  ;;  %v592_v12 = vld [vmem:[#allocation7 + $0x328] sm:$0xff]  ;;  %v3773_v16 = vcombine.low %v579_v57, %v583_v58 }
  0xcd   : > { %2039 = vmatprep.subr.bf16.mxu0 %v3734_v18  ;;  %2125 = vmatprep.subr.bf16.mxu1 %v3736_v19  ;;  %v4747_v13 = vld [vmem:[#allocation7 + $0x400] sm:$0xff]  ;;  %v4751_v15 = vld [vmem:[#allocation7 + $0x408] sm:$0xff]  ;;  %v3775_v18 = vcombine.low %v580_v59, %v584_v60  ;;  %v3782_v21 = vcombine.high %v587_v63, %v591_v6  ;;  %v3784_v22 = vcombine.high %v588_v11, %v592_v12  ;;  %v465_v60 = vsub.s32 1, %v4739_v41 }
  0xce   : > { %v4749_v14 = vld [vmem:[#allocation7 + $0x420] sm:$0xff]  ;;  %v4753_v17 = vld [vmem:[#allocation7 + $0x428] sm:$0xff]  ;;  %v3783_v28 = vcombine.low %v588_v11, %v592_v12 }
  0xcf   : > { %v3813_v19 = vcombine.low %v4747_v13, %v4749_v14  ;;  %v3815_v20 = vcombine.low %v4751_v15, %v4753_v17  ;;  %v595_v23 = vld [vmem:[#allocation7 + $0x340] sm:$0xff]  ;;  %v3814_v51 = vcombine.high %v4747_v13, %v4749_v14 }
  0xd0   : > { %2040 = vmatpush1.bf16.msra.mxu0 %v3733_v24  ;;  %2126 = vmatpush1.bf16.msra.mxu1 %v3735_v25  ;;  %v599_v24 = vld [vmem:[#allocation7 + $0x360] sm:$0xff]  ;;  %v596_v25 = vld [vmem:[#allocation7 + $0x348] sm:$0xff] }
  0xd1   : > { %2041 = vmatprep.subr.bf16.mxu0 %v3742_v26  ;;  %2127 = vmatprep.subr.bf16.mxu1 %v3744_v27  ;;  %v600_v26 = vld [vmem:[#allocation7 + $0x368] sm:$0xff]  ;;  %v3781_v27 = vcombine.low %v587_v63, %v591_v6  ;;  %v3790_v29 = vcombine.high %v595_v23, %v599_v24  ;;  %v603_v31 = vld [vmem:[#allocation7 + $0x380] sm:$0xff]  ;;  %v473_v6 = vsub.s32 3, %v4739_v41 }
  0xd2   : > { %v3792_v30 = vcombine.high %v596_v25, %v600_v26  ;;  %v3791_v36 = vcombine.low %v596_v25, %v600_v26  ;;  %v611_v39 = vld [vmem:[#allocation7 + $0x3c0] sm:$0xff] }
  0xd3   : > { %v615_v40 = vld [vmem:[#allocation7 + $0x3e0] sm:$0xff]  ;;  %v474_v25 = vrot.slane %v4741_v50, %v473_v6  ;;  %v668_v6 = vld [vmem:[#allocation7 + $0x588] sm:$0xff] }
  0xd4   : > { %2042 = vmatpush1.bf16.msra.mxu0 %v3741_v32  ;;  %2128 = vmatpush1.bf16.msra.mxu1 %v3743_v33  ;;  %v607_v32 = vld [vmem:[#allocation7 + $0x3a0] sm:$0xff]  ;;  %v604_v33 = vld [vmem:[#allocation7 + $0x388] sm:$0xff]  ;;  %v3806_v46 = vcombine.high %v611_v39, %v615_v40  ;;  %v3805_v48 = vcombine.low %v611_v39, %v615_v40 }
  0xd5   : > { %2043 = vmatprep.subr.bf16.mxu0 %v3750_v34  ;;  %2129 = vmatprep.subr.bf16.mxu1 %v3752_v35  ;;  %v608_v34 = vld [vmem:[#allocation7 + $0x3a8] sm:$0xff]  ;;  %v3789_v35 = vcombine.low %v595_v23, %v599_v24  ;;  %v3798_v37 = vcombine.high %v603_v31, %v607_v32 }
  0xd6   : > { %v3800_v38 = vcombine.high %v604_v33, %v608_v34 }
  0xd8   : > { %2044 = vmatpush1.bf16.msra.mxu0 %v3749_v42  ;;  %2130 = vmatpush1.bf16.msra.mxu1 %v3751_v43  ;;  %v612_v42 = vld [vmem:[#allocation7 + $0x3c8] sm:$0xff] }
  0xd9   : > { %2045 = vmatprep.subr.bf16.mxu0 %v3758_v44  ;;  %2131 = vmatprep.subr.bf16.mxu1 %v3760_v45  ;;  %v616_v43 = vld [vmem:[#allocation7 + $0x3e8] sm:$0xff]  ;;  %v3797_v44 = vcombine.low %v603_v31, %v607_v32  ;;  %v3799_v45 = vcombine.low %v604_v33, %v608_v34  ;;  %v631_v31 = vld [vmem:[#allocation7 + $0x460] sm:$0xff] }
  0xda   : > { %v3808_v47 = vcombine.high %v612_v42, %v616_v43  ;;  %v3807_v49 = vcombine.low %v612_v42, %v616_v43  ;;  %v632_v32 = vld [vmem:[#allocation7 + $0x468] sm:$0xff]  ;;  %v643_v43 = vld [vmem:[#allocation7 + $0x4c0] sm:$0xff] }
  0xdc   : > { %2046 = vmatpush1.bf16.msra.mxu0 %v3757_v52  ;;  %2132 = vmatpush1.bf16.msra.mxu1 %v3759_v53  ;;  %v3816_v52 = vcombine.high %v4751_v15, %v4753_v17 }
  0xdd   : > { %2047 = vmatprep.subr.bf16.mxu0 %v3766_v55  ;;  %2133 = vmatprep.subr.bf16.mxu1 %v3768_v56 }
  0xe0   : > { %2048 = vmatpush1.bf16.msra.mxu0 %v3765_v61  ;;  %2134 = vmatpush1.bf16.msra.mxu1 %v3767_v62  ;;  %v4765_v61 = vsub.s32 0, %v4739_v41 }
  0xe1   : > { %2049 = vmatprep.subr.bf16.mxu0 %v3774_v4  ;;  %2135 = vmatprep.subr.bf16.mxu1 %v3776_v5  ;;  %v466_v5 = vrot.slane %v4741_v50, %v465_v60 }
  0xe2   : > { %v462_v12 = vrot.slane %v4741_v50, %v4765_v61 }
  0xe4   : > { %2050 = vmatpush1.bf16.msra.mxu0 %v3773_v16  ;;  %2136 = vmatpush1.bf16.msra.mxu1 %v3775_v18 }
  0xe5   : > { %2051 = vmatprep.subr.bf16.mxu0 %v3782_v21  ;;  %2137 = vmatprep.subr.bf16.mxu1 %v3784_v22 }
  0xe8   : > { %2052 = vmatpush1.bf16.msra.mxu0 %v3781_v27  ;;  %2138 = vmatpush1.bf16.msra.mxu1 %v3783_v28  ;;  %v627_v28 = vld [vmem:[#allocation7 + $0x440] sm:$0xff] }
  0xe9   : > { %2053 = vmatprep.subr.bf16.mxu0 %v3790_v29  ;;  %2139 = vmatprep.subr.bf16.mxu1 %v3792_v30  ;;  %v3822_v50 = vcombine.high %v627_v28, %v631_v31 }
  0xec   : > { %2054 = vmatpush1.bf16.msra.mxu0 %v3789_v35  ;;  %2140 = vmatpush1.bf16.msra.mxu1 %v3791_v36  ;;  %v639_v35 = vld [vmem:[#allocation7 + $0x4a0] sm:$0xff]  ;;  %v640_v36 = vld [vmem:[#allocation7 + $0x4a8] sm:$0xff] }
  0xed   : > { %2055 = vmatprep.subr.bf16.mxu0 %v3798_v37  ;;  %2141 = vmatprep.subr.bf16.mxu1 %v3800_v38  ;;  %v3821_v38 = vcombine.low %v627_v28, %v631_v31  ;;  %v687_v28 = vld [vmem:[#allocation7 + $0x620] sm:$0xff] }
  0xf0   : > { %2056 = vmatpush1.bf16.msra.mxu0 %v3797_v44  ;;  %2142 = vmatpush1.bf16.msra.mxu1 %v3799_v45  ;;  %v647_v44 = vld [vmem:[#allocation7 + $0x4e0] sm:$0xff]  ;;  %v644_v45 = vld [vmem:[#allocation7 + $0x4c8] sm:$0xff] }
  0xf1   : > { %2057 = vmatprep.subr.bf16.mxu0 %v3806_v46  ;;  %2143 = vmatprep.subr.bf16.mxu1 %v3808_v47  ;;  %v648_v46 = vld [vmem:[#allocation7 + $0x4e8] sm:$0xff]  ;;  %v3838_v15 = vcombine.high %v643_v43, %v647_v44 }
  0xf2   : > { %v3840_v17 = vcombine.high %v644_v45, %v648_v46  ;;  %v652_v47 = vld [vmem:[#allocation7 + $0x508] sm:$0xff] }
  0xf4   : > { %2058 = vmatpush1.bf16.msra.mxu0 %v3805_v48  ;;  %2144 = vmatpush1.bf16.msra.mxu1 %v3807_v49  ;;  %v656_v48 = vld [vmem:[#allocation7 + $0x528] sm:$0xff]  ;;  %v3837_v49 = vcombine.low %v643_v43, %v647_v44 }
  0xf5   : > { %2070 = vmatprep.subr.bf16.mxu0 %v3814_v51  ;;  %2156 = vmatprep.subr.bf16.mxu1 %v3816_v52  ;;  %v3839_v51 = vcombine.low %v644_v45, %v648_v46  ;;  %v3847_v60 = vcombine.low %v652_v47, %v656_v48  ;;  %v700_v43 = vld [vmem:[#allocation7 + $0x688] sm:$0xff] }
  0xf6   : > { %v704_v44 = vld [vmem:[#allocation7 + $0x6a8] sm:$0xff] }
 0x147   : > { %v436_v53 = vpop.xlane.xlu0 %435 }
 0x148   : > { %v443_v55 = vmul.f32 0.001953125, %v436_v53  ;;  %v3848_v53 = vcombine.high %v652_v47, %v656_v48  ;;  %v3895_v48 = vcombine.low %v700_v43, %v704_v44 }
 0x14a   : > { %v445_v56 = vadd.f32 1e-05, %v443_v55  ;;  %v659_v55 = vld [vmem:[#allocation7 + $0x540] sm:$0xff] }
 0x14b   : > { %v441_v57 = vpop.xlane.xlu0 %440 }
 0x14c   : > { %4102 = vrsqrt.f32 %v445_v56  ;;  %v444_v58 = vmul.f32 0.001953125, %v441_v57  ;;  %v663_v56 = vld [vmem:[#allocation7 + $0x560] sm:$0xff]  ;;  %v660_v57 = vld [vmem:[#allocation7 + $0x548] sm:$0xff] }
 0x14e   : > { %v446_v59 = vadd.f32 1e-05, %v444_v58  ;;  %v664_v58 = vld [vmem:[#allocation7 + $0x568] sm:$0xff] }
 0x150   : > { %4104 = vrsqrt.f32 %v446_v59 }
 0x156   : > { %v4103_v62 = vpop.eup %4102 }
 0x157   : > { %v451_v63 = vmul.f32 %v4103_v62, %v4711_v2  ;;  %v450_v4 = vmul.f32 %v4103_v62, %v4709_v1  ;;  %v449_v11 = vmul.f32 %v4103_v62, %v4707_v0  ;;  %v452_v24 = vmul.f32 %v4103_v62, %v4713_v3  ;;  %v635_v3 = vld [vmem:[#allocation7 + $0x480] sm:$0xff] }
 0x158   : > { %v3830_v40 = vcombine.high %v635_v3, %v639_v35  ;;  %v3829_v13 = vcombine.low %v635_v3, %v639_v35  ;;  %v3854_v62 = vcombine.high %v659_v55, %v663_v56  ;;  %v691_v3 = vld [vmem:[#allocation7 + $0x640] sm:$0xff]  ;;  %v696_v35 = vld [vmem:[#allocation7 + $0x668] sm:$0xff] }
 0x159   : > { %v481_v16 = vmul.f32 %v4745_v54, %v451_v63  ;;  %v480_v23 = vmul.f32 %v466_v5, %v450_v4  ;;  %v479_v26 = vmul.f32 %v462_v12, %v449_v11  ;;  %v482_v33 = vmul.f32 %v474_v25, %v452_v24  ;;  %v667_v4 = vld [vmem:[#allocation7 + $0x580] sm:$0xff]  ;;  %v672_v11 = vld [vmem:[#allocation7 + $0x5a8] sm:$0xff] }
 0x15a   : > { %v4105_v18 = vpop.eup %4104  ;;  %v3856_v63 = vcombine.high %v660_v57, %v664_v58 }
 0x15b   : > { %v454_v21 = vmul.f32 %v4105_v18, %v4723_v8  ;;  %v453_v22 = vmul.f32 %v4105_v18, %v4721_v7  ;;  %v456_v2 = vmul.f32 %v4105_v18, %v4727_v10  ;;  %v455_v1 = vmul.f32 %v4105_v18, %v4725_v9  ;;  %v628_v8 = vld [vmem:[#allocation7 + $0x448] sm:$0xff] }
 0x15c   : > { %v3824_v34 = vcombine.high %v628_v8, %v632_v32  ;;  %v3823_v39 = vcombine.low %v628_v8, %v632_v32 }
 0x15d   : > { %v484_v0 = vmul.f32 %v466_v5, %v454_v21  ;;  %v483_v27 = vmul.f32 %v462_v12, %v453_v22  ;;  %v485_v29 = vmul.f32 %v4745_v54, %v455_v1  ;;  %v486_v30 = vmul.f32 %v474_v25, %v456_v2  ;;  %v636_v54 = vld [vmem:[#allocation7 + $0x488] sm:$0xff]  ;;  %v671_v5 = vld [vmem:[#allocation7 + $0x5a0] sm:$0xff] }
 0x15e   : > { %v3832_v42 = vcombine.high %v636_v54, %v640_v36  ;;  %v3831_v14 = vcombine.low %v636_v54, %v640_v36  ;;  %v3853_v12 = vcombine.low %v659_v55, %v663_v56  ;;  %v3862_v18 = vcombine.high %v667_v4, %v671_v5  ;;  %v675_v22 = vld [vmem:[#allocation7 + $0x5c0] sm:$0xff]  ;;  %v676_v1 = vld [vmem:[#allocation7 + $0x5c8] sm:$0xff] }
 0x15f   : > { %v4782_v7 = vpack.c.bf16 %v484_v0, %v480_v23  ;;  %v4784_v10 = vpack.c.bf16 %v483_v27, %v479_v26  ;;  %v4786_v9 = vpack.c.bf16 %v485_v29, %v481_v16  ;;  %v4792_v37 = vpack.c.bf16 %v486_v30, %v482_v33  ;;  %v679_v2 = vld [vmem:[#allocation7 + $0x5e0] sm:$0xff]  ;;  %v680_v23 = vld [vmem:[#allocation7 + $0x5e8] sm:$0xff] }
 0x160   : > { %v3855_v16 = vcombine.low %v660_v57, %v664_v58  ;;  %v3864_v21 = vcombine.high %v668_v6, %v672_v11  ;;  %v3861_v24 = vcombine.low %v667_v4, %v671_v5  ;;  %v3863_v25 = vcombine.low %v668_v6, %v672_v11  ;;  %v683_v27 = vld [vmem:[#allocation7 + $0x600] sm:$0xff]  ;;  %v684_v29 = vld [vmem:[#allocation7 + $0x608] sm:$0xff] }
 0x161   : > { %2059 = vmatprep.mubr.bf16.mxu0 %v4782_v7  ;;  %2145 = vmatprep.mubr.bf16.mxu1 %v4782_v7  ;;  %v3870_v0 = vcombine.high %v675_v22, %v679_v2  ;;  %v3872_v26 = vcombine.high %v676_v1, %v680_v23  ;;  %v688_v30 = vld [vmem:[#allocation7 + $0x628] sm:$0xff]  ;;  %v3869_v31 = vcombine.low %v675_v22, %v679_v2 }
 0x162   : > { %2060 = vmatmul.mubr.bf16.vlgmr.msra.gmra.mrb[0].mxu0 %v4784_v10  ;;  %2146 = vmatmul.mubr.bf16.vlgmr.msra.gmra.mrb[0].mxu1 %v4784_v10  ;;  %v3871_v8 = vcombine.low %v676_v1, %v680_v23  ;;  %v3878_v32 = vcombine.high %v683_v27, %v687_v28  ;;  %v3880_v33 = vcombine.high %v684_v29, %v688_v30  ;;  %v716_v55 = vld [vmem:[#allocation7 + $0x708] sm:$0xff] }
 0x163   : > { %2071 = vmatpush1.bf16.msra.mxu0 %v3813_v19  ;;  %2157 = vmatpush1.bf16.msra.mxu1 %v3815_v20  ;;  %v651_v19 = vld [vmem:[#allocation7 + $0x500] sm:$0xff]  ;;  %v3877_v54 = vcombine.low %v683_v27, %v687_v28  ;;  %v3879_v36 = vcombine.low %v684_v29, %v688_v30  ;;  %v720_v56 = vld [vmem:[#allocation7 + $0x728] sm:$0xff] }
 0x164   : > { %2102 = vmatprep.mubr.bf16.mxu0 %v4792_v37  ;;  %2188 = vmatprep.mubr.bf16.mxu1 %v4792_v37  ;;  %v655_v20 = vld [vmem:[#allocation7 + $0x520] sm:$0xff]  ;;  %v724_v4 = vld [vmem:[#allocation7 + $0x748] sm:$0xff]  ;;  %v3911_v11 = vcombine.low %v716_v55, %v720_v56 }
 0x165   : > { %2072 = vmatprep.subr.bf16.mxu0 %v3822_v50  ;;  %2158 = vmatprep.subr.bf16.mxu1 %v3824_v34  ;;  %v3846_v52 = vcombine.high %v651_v19, %v655_v20  ;;  %v3845_v59 = vcombine.low %v651_v19, %v655_v20  ;;  %v695_v50 = vld [vmem:[#allocation7 + $0x660] sm:$0xff]  ;;  %v692_v34 = vld [vmem:[#allocation7 + $0x648] sm:$0xff] }
 0x166   : > { %v3885_v45 = vcombine.low %v691_v3, %v695_v50  ;;  %v3887_v46 = vcombine.low %v692_v34, %v696_v35  ;;  %v708_v19 = vld [vmem:[#allocation7 + $0x6c8] sm:$0xff] }
 0x167   : > { %2073 = vmatpush1.bf16.msra.mxu0 %v3821_v38  ;;  %2159 = vmatpush1.bf16.msra.mxu1 %v3823_v39  ;;  %v3886_v38 = vcombine.high %v691_v3, %v695_v50  ;;  %v3888_v39 = vcombine.high %v692_v34, %v696_v35  ;;  %v712_v20 = vld [vmem:[#allocation7 + $0x6e8] sm:$0xff]  ;;  %v494_v3 = vld [vmem:[#allocation7 + $0x18] sm:$0xff] }
 0x168   : > { %2074 = vmatprep.subr.bf16.mxu0 %v3830_v40  ;;  %2160 = vmatprep.subr.bf16.mxu1 %v3832_v42  ;;  %v699_v40 = vld [vmem:[#allocation7 + $0x680] sm:$0xff]  ;;  %v3903_v58 = vcombine.low %v708_v19, %v712_v20  ;;  %v728_v5 = vld [vmem:[#allocation7 + $0x768] sm:$0xff]  ;;  %v498_v50 = vld [vmem:[#allocation7 + $0x38] sm:$0xff] }
 0x169   : > { %v703_v42 = vld [vmem:[#allocation7 + $0x6a0] sm:$0xff]  ;;  %v732_v22 = vld [vmem:[#allocation7 + $0x788] sm:$0xff]  ;;  %v3919_v23 = vcombine.low %v724_v4, %v728_v5 }
 0x16a   : > { %v3893_v47 = vcombine.low %v699_v40, %v703_v42  ;;  %v736_v2 = vld [vmem:[#allocation7 + $0x7a8] sm:$0xff] }
 0x16b   : > { %2075 = vmatpush1.bf16.msra.mxu0 %v3829_v13  ;;  %2161 = vmatpush1.bf16.msra.mxu1 %v3831_v14  ;;  %v3894_v13 = vcombine.high %v699_v40, %v703_v42  ;;  %v3896_v14 = vcombine.high %v700_v43, %v704_v44  ;;  %v740_v27 = vld [vmem:[#allocation7 + $0x7c8] sm:$0xff]  ;;  %v3927_v30 = vcombine.low %v732_v22, %v736_v2  ;;  %v502_v40 = vld [vmem:[#allocation7 + $0x58] sm:$0xff] }
 0x16c   : > { %2076 = vmatprep.subr.bf16.mxu0 %v3838_v15  ;;  %2162 = vmatprep.subr.bf16.mxu1 %v3840_v17  ;;  %v707_v15 = vld [vmem:[#allocation7 + $0x6c0] sm:$0xff]  ;;  %v744_v28 = vld [vmem:[#allocation7 + $0x7e8] sm:$0xff]  ;;  %v506_v42 = vld [vmem:[#allocation7 + $0x78] sm:$0xff]  ;;  %v3691_v44 = vcombine.low %v494_v3, %v498_v50 }
 0x16d   : > { %v711_v17 = vld [vmem:[#allocation7 + $0x6e0] sm:$0xff]  ;;  %v3935_v35 = vcombine.low %v740_v27, %v744_v28 }
 0x16e   : > { %v3901_v57 = vcombine.low %v707_v15, %v711_v17 }
 0x16f   : > { %2077 = vmatpush1.bf16.msra.mxu0 %v3837_v49  ;;  %2163 = vmatpush1.bf16.msra.mxu1 %v3839_v51  ;;  %v3902_v49 = vcombine.high %v707_v15, %v711_v17  ;;  %v3904_v51 = vcombine.high %v708_v19, %v712_v20  ;;  %v510_v15 = vld [vmem:[#allocation7 + $0x98] sm:$0xff]  ;;  %v3699_v20 = vcombine.low %v502_v40, %v506_v42 }
 0x170   : > { %2078 = vmatprep.subr.bf16.mxu0 %v3846_v52  ;;  %2164 = vmatprep.subr.bf16.mxu1 %v3848_v53  ;;  %v715_v52 = vld [vmem:[#allocation7 + $0x700] sm:$0xff]  ;;  %v514_v17 = vld [vmem:[#allocation7 + $0xb8] sm:$0xff] }
 0x171   : > { %v719_v53 = vld [vmem:[#allocation7 + $0x720] sm:$0xff] }
 0x172   : > { %v3909_v6 = vcombine.low %v715_v52, %v719_v53 }
 0x173   : > { %2079 = vmatpush1.bf16.msra.mxu0 %v3845_v59  ;;  %2165 = vmatpush1.bf16.msra.mxu1 %v3847_v60  ;;  %v3910_v59 = vcombine.high %v715_v52, %v719_v53  ;;  %v3912_v60 = vcombine.high %v716_v55, %v720_v56  ;;  %v518_v52 = vld [vmem:[#allocation7 + $0xd8] sm:$0xff]  ;;  %v3707_v56 = vcombine.low %v510_v15, %v514_v17 }
 0x174   : > { %2080 = vmatprep.subr.bf16.mxu0 %v3854_v62  ;;  %2166 = vmatprep.subr.bf16.mxu1 %v3856_v63  ;;  %v723_v62 = vld [vmem:[#allocation7 + $0x740] sm:$0xff]  ;;  %v522_v53 = vld [vmem:[#allocation7 + $0xf8] sm:$0xff] }
 0x175   : > { %v727_v63 = vld [vmem:[#allocation7 + $0x760] sm:$0xff] }
 0x176   : > { %v3917_v1 = vcombine.low %v723_v62, %v727_v63 }
 0x177   : > { %2081 = vmatpush1.bf16.msra.mxu0 %v3853_v12  ;;  %2167 = vmatpush1.bf16.msra.mxu1 %v3855_v16  ;;  %v3918_v12 = vcombine.high %v723_v62, %v727_v63  ;;  %v3920_v16 = vcombine.high %v724_v4, %v728_v5  ;;  %v530_v62 = vld [vmem:[#allocation7 + $0x138] sm:$0xff]  ;;  %v3715_v4 = vcombine.low %v518_v52, %v522_v53 }
 0x178   : > { %2082 = vmatprep.subr.bf16.mxu0 %v3862_v18  ;;  %2168 = vmatprep.subr.bf16.mxu1 %v3864_v21  ;;  %v731_v18 = vld [vmem:[#allocation7 + $0x780] sm:$0xff] }
 0x179   : > { %v735_v21 = vld [vmem:[#allocation7 + $0x7a0] sm:$0xff] }
 0x17a   : > { %v3925_v29 = vcombine.low %v731_v18, %v735_v21 }
 0x17b   : > { %2083 = vmatpush1.bf16.msra.mxu0 %v3861_v24  ;;  %2169 = vmatpush1.bf16.msra.mxu1 %v3863_v25  ;;  %v3926_v24 = vcombine.high %v731_v18, %v735_v21  ;;  %v3928_v25 = vcombine.high %v732_v22, %v736_v2  ;;  %v538_v18 = vld [vmem:[#allocation7 + $0x178] sm:$0xff] }
 0x17c   : > { %2084 = vmatprep.subr.bf16.mxu0 %v3870_v0  ;;  %2170 = vmatprep.subr.bf16.mxu1 %v3872_v26  ;;  %v739_v0 = vld [vmem:[#allocation7 + $0x7c0] sm:$0xff] }
 0x17d   : > { %v743_v26 = vld [vmem:[#allocation7 + $0x7e0] sm:$0xff] }
 0x17e   : > { %v3933_v34 = vcombine.low %v739_v0, %v743_v26 }
 0x17f   : > { %2085 = vmatpush1.bf16.msra.mxu0 %v3869_v31  ;;  %2171 = vmatpush1.bf16.msra.mxu1 %v3871_v8  ;;  %v3934_v31 = vcombine.high %v739_v0, %v743_v26  ;;  %v3936_v8 = vcombine.high %v740_v27, %v744_v28  ;;  %v546_v0 = vld [vmem:[#allocation7 + $0x1b8] sm:$0xff] }
 0x180   : > { %2086 = vmatprep.subr.bf16.mxu0 %v3878_v32  ;;  %2172 = vmatprep.subr.bf16.mxu1 %v3880_v33  ;;  %v493_v32 = vld [vmem:[#allocation7 + $0x10] sm:$0xff] }
 0x181   : > { %v497_v33 = vld [vmem:[#allocation7 + $0x30] sm:$0xff] }
 0x182   : > { %v3689_v43 = vcombine.low %v493_v32, %v497_v33 }
 0x183   : > { %2087 = vmatpush1.bf16.msra.mxu0 %v3877_v54  ;;  %2173 = vmatpush1.bf16.msra.mxu1 %v3879_v36  ;;  %v3690_v54 = vcombine.high %v493_v32, %v497_v33  ;;  %v3692_v36 = vcombine.high %v494_v3, %v498_v50  ;;  %v554_v32 = vld [vmem:[#allocation7 + $0x1f8] sm:$0xff] }
 0x184   : > { %2088 = vmatprep.subr.bf16.mxu0 %v3886_v38  ;;  %2174 = vmatprep.subr.bf16.mxu1 %v3888_v39  ;;  %v501_v38 = vld [vmem:[#allocation7 + $0x50] sm:$0xff] }
 0x185   : > { %v505_v39 = vld [vmem:[#allocation7 + $0x70] sm:$0xff] }
 0x186   : > { %v3697_v19 = vcombine.low %v501_v38, %v505_v39 }
 0x187   : > { %2089 = vmatpush1.bf16.msra.mxu0 %v3885_v45  ;;  %2175 = vmatpush1.bf16.msra.mxu1 %v3887_v46  ;;  %v3698_v45 = vcombine.high %v501_v38, %v505_v39  ;;  %v3700_v46 = vcombine.high %v502_v40, %v506_v42  ;;  %v562_v38 = vld [vmem:[#allocation7 + $0x238] sm:$0xff] }
 0x188   : > { %2090 = vmatprep.subr.bf16.mxu0 %v3894_v13  ;;  %2176 = vmatprep.subr.bf16.mxu1 %v3896_v14  ;;  %v509_v13 = vld [vmem:[#allocation7 + $0x90] sm:$0xff] }
 0x189   : > { %v513_v14 = vld [vmem:[#allocation7 + $0xb0] sm:$0xff] }
 0x18a   : > { %v3705_v55 = vcombine.low %v509_v13, %v513_v14 }
 0x18b   : > { %2091 = vmatpush1.bf16.msra.mxu0 %v3893_v47  ;;  %2177 = vmatpush1.bf16.msra.mxu1 %v3895_v48  ;;  %v3706_v47 = vcombine.high %v509_v13, %v513_v14  ;;  %v3708_v48 = vcombine.high %v510_v15, %v514_v17  ;;  %v570_v13 = vld [vmem:[#allocation7 + $0x278] sm:$0xff] }
 0x18c   : > { %2092 = vmatprep.subr.bf16.mxu0 %v3902_v49  ;;  %2178 = vmatprep.subr.bf16.mxu1 %v3904_v51  ;;  %v517_v49 = vld [vmem:[#allocation7 + $0xd0] sm:$0xff] }
 0x18d   : > { %v521_v51 = vld [vmem:[#allocation7 + $0xf0] sm:$0xff] }
 0x18e   : > { %v3713_v63 = vcombine.low %v517_v49, %v521_v51 }
 0x18f   : > { %2093 = vmatpush1.bf16.msra.mxu0 %v3901_v57  ;;  %2179 = vmatpush1.bf16.msra.mxu1 %v3903_v58  ;;  %v3714_v57 = vcombine.high %v517_v49, %v521_v51  ;;  %v3716_v58 = vcombine.high %v518_v52, %v522_v53  ;;  %v578_v49 = vld [vmem:[#allocation7 + $0x2b8] sm:$0xff] }
 0x190   : > { %2094 = vmatprep.subr.bf16.mxu0 %v3910_v59  ;;  %2180 = vmatprep.subr.bf16.mxu1 %v3912_v60  ;;  %v525_v59 = vld [vmem:[#allocation7 + $0x110] sm:$0xff] }
 0x191   : > { %v529_v60 = vld [vmem:[#allocation7 + $0x130] sm:$0xff] }
 0x192   : > { %v3722_v5 = vcombine.high %v525_v59, %v529_v60  ;;  %v3721_v21 = vcombine.low %v525_v59, %v529_v60  ;;  %v586_v59 = vld [vmem:[#allocation7 + $0x2f8] sm:$0xff] }
 0x193   : > { %2095 = vmatpush1.bf16.msra.mxu0 %v3909_v6  ;;  %2181 = vmatpush1.bf16.msra.mxu1 %v3911_v11  ;;  %v533_v11 = vld [vmem:[#allocation7 + $0x150] sm:$0xff] }
 0x194   : > { %2096 = vmatprep.subr.bf16.mxu0 %v3918_v12  ;;  %2182 = vmatprep.subr.bf16.mxu1 %v3920_v16  ;;  %v537_v12 = vld [vmem:[#allocation7 + $0x170] sm:$0xff]  ;;  %v534_v16 = vld [vmem:[#allocation7 + $0x158] sm:$0xff] }
 0x195   : > { %v3730_v2 = vcombine.high %v533_v11, %v537_v12  ;;  %v3729_v26 = vcombine.low %v533_v11, %v537_v12  ;;  %v3731_v27 = vcombine.low %v534_v16, %v538_v18  ;;  %v594_v11 = vld [vmem:[#allocation7 + $0x338] sm:$0xff] }
 0x197   : > { %2097 = vmatpush1.bf16.msra.mxu0 %v3917_v1  ;;  %2183 = vmatpush1.bf16.msra.mxu1 %v3919_v23  ;;  %v3732_v1 = vcombine.high %v534_v16, %v538_v18  ;;  %v541_v23 = vld [vmem:[#allocation7 + $0x190] sm:$0xff] }
 0x198   : > { %2098 = vmatprep.subr.bf16.mxu0 %v3926_v24  ;;  %2184 = vmatprep.subr.bf16.mxu1 %v3928_v25  ;;  %v545_v24 = vld [vmem:[#allocation7 + $0x1b0] sm:$0xff]  ;;  %v542_v25 = vld [vmem:[#allocation7 + $0x198] sm:$0xff] }
 0x199   : > { %v3738_v28 = vcombine.high %v541_v23, %v545_v24  ;;  %v3737_v33 = vcombine.low %v541_v23, %v545_v24  ;;  %v3739_v3 = vcombine.low %v542_v25, %v546_v0  ;;  %v602_v23 = vld [vmem:[#allocation7 + $0x378] sm:$0xff] }
 0x19b   : > { %2099 = vmatpush1.bf16.msra.mxu0 %v3925_v29  ;;  %2185 = vmatpush1.bf16.msra.mxu1 %v3927_v30  ;;  %v3740_v29 = vcombine.high %v542_v25, %v546_v0  ;;  %v549_v30 = vld [vmem:[#allocation7 + $0x1d0] sm:$0xff] }
 0x19c   : > { %2100 = vmatprep.subr.bf16.mxu0 %v3934_v31  ;;  %2186 = vmatprep.subr.bf16.mxu1 %v3936_v8  ;;  %v553_v31 = vld [vmem:[#allocation7 + $0x1f0] sm:$0xff]  ;;  %v550_v8 = vld [vmem:[#allocation7 + $0x1d8] sm:$0xff] }
 0x19d   : > { %v3746_v50 = vcombine.high %v549_v30, %v553_v31  ;;  %v3745_v39 = vcombine.low %v549_v30, %v553_v31  ;;  %v3747_v40 = vcombine.low %v550_v8, %v554_v32  ;;  %v610_v30 = vld [vmem:[#allocation7 + $0x3b8] sm:$0xff] }
 0x19f   : > { %2101 = vmatpush1.bf16.msra.mxu0 %v3933_v34  ;;  %2187 = vmatpush1.bf16.msra.mxu1 %v3935_v35  ;;  %v3748_v34 = vcombine.high %v550_v8, %v554_v32  ;;  %v557_v35 = vld [vmem:[#allocation7 + $0x210] sm:$0xff] }
 0x1a0   : > { %2199 = vmatprep.subr.bf16.mxu0 %v3690_v54  ;;  %2285 = vmatprep.subr.bf16.mxu1 %v3692_v36  ;;  %v561_v54 = vld [vmem:[#allocation7 + $0x230] sm:$0xff]  ;;  %v558_v36 = vld [vmem:[#allocation7 + $0x218] sm:$0xff] }
 0x1a1   : > { %v3754_v42 = vcombine.high %v557_v35, %v561_v54  ;;  %v3753_v14 = vcombine.low %v557_v35, %v561_v54  ;;  %v3755_v15 = vcombine.low %v558_v36, %v562_v38  ;;  %v618_v35 = vld [vmem:[#allocation7 + $0x3f8] sm:$0xff] }
 0x1a2   : > { %2103 = vmatmul.mubr.bf16.vlgmr.msra.gmra.mrb[0].mxu0 %v4786_v9  ;;  %2189 = vmatmul.mubr.bf16.vlgmr.msra.gmra.mrb[0].mxu1 %v4786_v9 }
 0x1a3   : > { %2200 = vmatpush1.bf16.msra.mxu0 %v3689_v43  ;;  %2231 = vmatprep.mubr.bf16.mxu0 %v4782_v7  ;;  %v3756_v43 = vcombine.high %v558_v36, %v562_v38 }
 0x1a4   : > { %2286 = vmatpush1.bf16.msra.mxu1 %v3691_v44  ;;  %2317 = vmatprep.mubr.bf16.mxu1 %v4782_v7  ;;  %v526_v7 = vld [vmem:[#allocation7 + $0x118] sm:$0xff]  ;;  %v565_v44 = vld [vmem:[#allocation7 + $0x250] sm:$0xff] }
 0x1a5   : > { %2201 = vmatprep.subr.bf16.mxu0 %v3698_v45  ;;  %2287 = vmatprep.subr.bf16.mxu1 %v3700_v46  ;;  %v3724_v6 = vcombine.high %v526_v7, %v530_v62  ;;  %v3723_v22 = vcombine.low %v526_v7, %v530_v62  ;;  %v569_v45 = vld [vmem:[#allocation7 + $0x270] sm:$0xff]  ;;  %v566_v46 = vld [vmem:[#allocation7 + $0x258] sm:$0xff] }
 0x1a6   : > { %v3762_v17 = vcombine.high %v565_v44, %v569_v45  ;;  %v3761_v51 = vcombine.low %v565_v44, %v569_v45  ;;  %v3763_v52 = vcombine.low %v566_v46, %v570_v13  ;;  %v626_v44 = vld [vmem:[#allocation7 + $0x438] sm:$0xff] }
 0x1a7   : > { %2202 = vmatpush1.bf16.msra.mxu0 %v3697_v19  ;;  %v3764_v19 = vcombine.high %v566_v46, %v570_v13 }
 0x1a8   : > { %2288 = vmatpush1.bf16.msra.mxu1 %v3699_v20  ;;  %2203 = vmatprep.subr.bf16.mxu0 %v3706_v47  ;;  %v573_v20 = vld [vmem:[#allocation7 + $0x290] sm:$0xff] }
 0x1a9   : > { %2289 = vmatprep.subr.bf16.mxu1 %v3708_v48  ;;  %v577_v47 = vld [vmem:[#allocation7 + $0x2b0] sm:$0xff]  ;;  %v574_v48 = vld [vmem:[#allocation7 + $0x298] sm:$0xff] }
 0x1aa   : > { %v3770_v53 = vcombine.high %v573_v20, %v577_v47  ;;  %v3769_v60 = vcombine.low %v573_v20, %v577_v47  ;;  %v3771_v7 = vcombine.low %v574_v48, %v578_v49  ;;  %v630_v20 = vld [vmem:[#allocation7 + $0x458] sm:$0xff] }
 0x1ab   : > { %2204 = vmatpush1.bf16.msra.mxu0 %v3705_v55  ;;  %v3772_v55 = vcombine.high %v574_v48, %v578_v49  ;;  %v634_v47 = vld [vmem:[#allocation7 + $0x478] sm:$0xff] }
 0x1ac   : > { %2290 = vmatpush1.bf16.msra.mxu1 %v3707_v56  ;;  %2205 = vmatprep.subr.bf16.mxu0 %v3714_v57  ;;  %v581_v56 = vld [vmem:[#allocation7 + $0x2d0] sm:$0xff] }
 0x1ad   : > { %2291 = vmatprep.subr.bf16.mxu1 %v3716_v58  ;;  %v585_v57 = vld [vmem:[#allocation7 + $0x2f0] sm:$0xff]  ;;  %v582_v58 = vld [vmem:[#allocation7 + $0x2d8] sm:$0xff] }
 0x1ae   : > { %v3778_v62 = vcombine.high %v581_v56, %v585_v57  ;;  %v3777_v12 = vcombine.low %v581_v56, %v585_v57  ;;  %v3779_v16 = vcombine.low %v582_v58, %v586_v59  ;;  %v642_v56 = vld [vmem:[#allocation7 + $0x4b8] sm:$0xff] }
 0x1af   : > { %2206 = vmatpush1.bf16.msra.mxu0 %v3713_v63  ;;  %v3780_v63 = vcombine.high %v582_v58, %v586_v59  ;;  %v3827_v58 = vcombine.low %v630_v20, %v634_v47 }
 0x1b0   : > { %2292 = vmatpush1.bf16.msra.mxu1 %v3715_v4  ;;  %2207 = vmatprep.subr.bf16.mxu0 %v3722_v5  ;;  %v589_v4 = vld [vmem:[#allocation7 + $0x310] sm:$0xff] }
 0x1b1   : > { %2293 = vmatprep.subr.bf16.mxu1 %v3724_v6  ;;  %v593_v5 = vld [vmem:[#allocation7 + $0x330] sm:$0xff]  ;;  %v590_v6 = vld [vmem:[#allocation7 + $0x318] sm:$0xff] }
 0x1b2   : > { %v3786_v18 = vcombine.high %v589_v4, %v593_v5  ;;  %v3785_v24 = vcombine.low %v589_v4, %v593_v5  ;;  %v3787_v25 = vcombine.low %v590_v6, %v594_v11  ;;  %v650_v4 = vld [vmem:[#allocation7 + $0x4f8] sm:$0xff] }
 0x1b3   : > { %2208 = vmatpush1.bf16.msra.mxu0 %v3721_v21  ;;  %v3788_v21 = vcombine.high %v590_v6, %v594_v11 }
 0x1b4   : > { %2294 = vmatpush1.bf16.msra.mxu1 %v3723_v22  ;;  %2209 = vmatprep.subr.bf16.mxu0 %v3730_v2  ;;  %v597_v22 = vld [vmem:[#allocation7 + $0x350] sm:$0xff] }
 0x1b5   : > { %2295 = vmatprep.subr.bf16.mxu1 %v3732_v1  ;;  %v601_v2 = vld [vmem:[#allocation7 + $0x370] sm:$0xff]  ;;  %v598_v1 = vld [vmem:[#allocation7 + $0x358] sm:$0xff] }
 0x1b6   : > { %v3794_v0 = vcombine.high %v597_v22, %v601_v2  ;;  %v3793_v31 = vcombine.low %v597_v22, %v601_v2  ;;  %v3795_v8 = vcombine.low %v598_v1, %v602_v23 }
 0x1b7   : > { %2210 = vmatpush1.bf16.msra.mxu0 %v3729_v26  ;;  %v3796_v26 = vcombine.high %v598_v1, %v602_v23  ;;  %v661_v23 = vld [vmem:[#allocation7 + $0x550] sm:$0xff] }
 0x1b8   : > { %2296 = vmatpush1.bf16.msra.mxu1 %v3731_v27  ;;  %2211 = vmatprep.subr.bf16.mxu0 %v3738_v28  ;;  %v605_v27 = vld [vmem:[#allocation7 + $0x390] sm:$0xff] }
 0x1b9   : > { %2297 = vmatprep.subr.bf16.mxu1 %v3740_v29  ;;  %v609_v28 = vld [vmem:[#allocation7 + $0x3b0] sm:$0xff]  ;;  %v606_v29 = vld [vmem:[#allocation7 + $0x398] sm:$0xff] }
 0x1ba   : > { %v3802_v32 = vcombine.high %v605_v27, %v609_v28  ;;  %v3801_v54 = vcombine.low %v605_v27, %v609_v28  ;;  %v3803_v36 = vcombine.low %v606_v29, %v610_v30 }
 0x1bb   : > { %2212 = vmatpush1.bf16.msra.mxu0 %v3737_v33  ;;  %v3804_v33 = vcombine.high %v606_v29, %v610_v30  ;;  %v669_v30 = vld [vmem:[#allocation7 + $0x590] sm:$0xff] }
 0x1bc   : > { %2298 = vmatpush1.bf16.msra.mxu1 %v3739_v3  ;;  %2213 = vmatprep.subr.bf16.mxu0 %v3746_v50  ;;  %v613_v3 = vld [vmem:[#allocation7 + $0x3d0] sm:$0xff] }
 0x1bd   : > { %2299 = vmatprep.subr.bf16.mxu1 %v3748_v34  ;;  %v617_v50 = vld [vmem:[#allocation7 + $0x3f0] sm:$0xff]  ;;  %v614_v34 = vld [vmem:[#allocation7 + $0x3d8] sm:$0xff] }
 0x1be   : > { %v3810_v38 = vcombine.high %v613_v3, %v617_v50  ;;  %v3809_v45 = vcombine.low %v613_v3, %v617_v50  ;;  %v3811_v46 = vcombine.low %v614_v34, %v618_v35 }
 0x1bf   : > { %2214 = vmatpush1.bf16.msra.mxu0 %v3745_v39  ;;  %v3812_v39 = vcombine.high %v614_v34, %v618_v35  ;;  %v677_v35 = vld [vmem:[#allocation7 + $0x5d0] sm:$0xff] }
 0x1c0   : > { %2300 = vmatpush1.bf16.msra.mxu1 %v3747_v40  ;;  %2215 = vmatprep.subr.bf16.mxu0 %v3754_v42  ;;  %v621_v40 = vld [vmem:[#allocation7 + $0x410] sm:$0xff] }
 0x1c1   : > { %2301 = vmatprep.subr.bf16.mxu1 %v3756_v43  ;;  %v625_v42 = vld [vmem:[#allocation7 + $0x430] sm:$0xff]  ;;  %v622_v43 = vld [vmem:[#allocation7 + $0x418] sm:$0xff] }
 0x1c2   : > { %v3818_v13 = vcombine.high %v621_v40, %v625_v42  ;;  %v3819_v48 = vcombine.low %v622_v43, %v626_v44 }
 0x1c3   : > { %2216 = vmatpush1.bf16.msra.mxu0 %v3753_v14  ;;  %v3820_v14 = vcombine.high %v622_v43, %v626_v44  ;;  %v685_v44 = vld [vmem:[#allocation7 + $0x610] sm:$0xff] }
 0x1c4   : > { %2302 = vmatpush1.bf16.msra.mxu1 %v3755_v15  ;;  %2217 = vmatprep.subr.bf16.mxu0 %v3762_v17  ;;  %v629_v15 = vld [vmem:[#allocation7 + $0x450] sm:$0xff] }
 0x1c5   : > { %2303 = vmatprep.subr.bf16.mxu1 %v3764_v19  ;;  %v633_v17 = vld [vmem:[#allocation7 + $0x470] sm:$0xff]  ;;  %v3817_v19 = vcombine.low %v621_v40, %v625_v42 }
 0x1c6   : > { %v3826_v49 = vcombine.high %v629_v15, %v633_v17  ;;  %v3825_v57 = vcombine.low %v629_v15, %v633_v17 }
 0x1c7   : > { %2218 = vmatpush1.bf16.msra.mxu0 %v3761_v51  ;;  %v637_v51 = vld [vmem:[#allocation7 + $0x490] sm:$0xff] }
 0x1c8   : > { %2304 = vmatpush1.bf16.msra.mxu1 %v3763_v52  ;;  %2219 = vmatprep.subr.bf16.mxu0 %v3770_v53  ;;  %v641_v52 = vld [vmem:[#allocation7 + $0x4b0] sm:$0xff]  ;;  %v3828_v53 = vcombine.high %v630_v20, %v634_v47 }
 0x1c9   : > { %2305 = vmatprep.subr.bf16.mxu1 %v3772_v55  ;;  %v638_v55 = vld [vmem:[#allocation7 + $0x498] sm:$0xff]  ;;  %v3834_v59 = vcombine.high %v637_v51, %v641_v52  ;;  %v3833_v5 = vcombine.low %v637_v51, %v641_v52  ;;  %v693_v20 = vld [vmem:[#allocation7 + $0x650] sm:$0xff] }
 0x1ca   : > { %v697_v47 = vld [vmem:[#allocation7 + $0x670] sm:$0xff] }
 0x1cb   : > { %2220 = vmatpush1.bf16.msra.mxu0 %v3769_v60  ;;  %v3836_v60 = vcombine.high %v638_v55, %v642_v56 }
 0x1cc   : > { %2306 = vmatpush1.bf16.msra.mxu1 %v3771_v7  ;;  %2221 = vmatprep.subr.bf16.mxu0 %v3778_v62  ;;  %v645_v7 = vld [vmem:[#allocation7 + $0x4d0] sm:$0xff] }
 0x1cd   : > { %2307 = vmatprep.subr.bf16.mxu1 %v3780_v63  ;;  %v649_v62 = vld [vmem:[#allocation7 + $0x4f0] sm:$0xff]  ;;  %v646_v63 = vld [vmem:[#allocation7 + $0x4d8] sm:$0xff] }
 0x1ce   : > { %v3842_v6 = vcombine.high %v645_v7, %v649_v62  ;;  %v3844_v11 = vcombine.high %v646_v63, %v650_v4  ;;  %v3843_v22 = vcombine.low %v646_v63, %v650_v4  ;;  %v709_v4 = vld [vmem:[#allocation7 + $0x6d0] sm:$0xff] }
 0x1cf   : > { %2222 = vmatpush1.bf16.msra.mxu0 %v3777_v12  ;;  %v653_v12 = vld [vmem:[#allocation7 + $0x510] sm:$0xff] }
 0x1d0   : > { %2308 = vmatpush1.bf16.msra.mxu1 %v3779_v16  ;;  %2223 = vmatprep.subr.bf16.mxu0 %v3786_v18  ;;  %v657_v16 = vld [vmem:[#allocation7 + $0x530] sm:$0xff]  ;;  %v654_v18 = vld [vmem:[#allocation7 + $0x518] sm:$0xff] }
 0x1d1   : > { %2309 = vmatprep.subr.bf16.mxu1 %v3788_v21  ;;  %v658_v21 = vld [vmem:[#allocation7 + $0x538] sm:$0xff]  ;;  %v3850_v2 = vcombine.high %v653_v12, %v657_v16 }
 0x1d2   : > { %v3852_v1 = vcombine.high %v654_v18, %v658_v21  ;;  %v3851_v27 = vcombine.low %v654_v18, %v658_v21  ;;  %v717_v21 = vld [vmem:[#allocation7 + $0x710] sm:$0xff] }
 0x1d3   : > { %2224 = vmatpush1.bf16.msra.mxu0 %v3785_v24  ;;  %v665_v24 = vld [vmem:[#allocation7 + $0x570] sm:$0xff] }
 0x1d4   : > { %2310 = vmatpush1.bf16.msra.mxu1 %v3787_v25  ;;  %2225 = vmatprep.subr.bf16.mxu0 %v3794_v0  ;;  %v662_v25 = vld [vmem:[#allocation7 + $0x558] sm:$0xff]  ;;  %v3858_v28 = vcombine.high %v661_v23, %v665_v24 }
 0x1d5   : > { %2311 = vmatprep.subr.bf16.mxu1 %v3796_v26  ;;  %v666_v0 = vld [vmem:[#allocation7 + $0x578] sm:$0xff]  ;;  %v3849_v26 = vcombine.low %v653_v12, %v657_v16 }
 0x1d6   : > { %v3860_v29 = vcombine.high %v662_v25, %v666_v0  ;;  %v3859_v3 = vcombine.low %v662_v25, %v666_v0  ;;  %v725_v0 = vld [vmem:[#allocation7 + $0x750] sm:$0xff] }
 0x1d7   : > { %2226 = vmatpush1.bf16.msra.mxu0 %v3793_v31  ;;  %v673_v31 = vld [vmem:[#allocation7 + $0x5b0] sm:$0xff] }
 0x1d8   : > { %2312 = vmatpush1.bf16.msra.mxu1 %v3795_v8  ;;  %2227 = vmatprep.subr.bf16.mxu0 %v3802_v32  ;;  %v670_v8 = vld [vmem:[#allocation7 + $0x598] sm:$0xff]  ;;  %v3866_v50 = vcombine.high %v669_v30, %v673_v31 }
 0x1d9   : > { %2313 = vmatprep.subr.bf16.mxu1 %v3804_v33  ;;  %v674_v32 = vld [vmem:[#allocation7 + $0x5b8] sm:$0xff]  ;;  %v3857_v33 = vcombine.low %v661_v23, %v665_v24 }
 0x1da   : > { %v3868_v34 = vcombine.high %v670_v8, %v674_v32  ;;  %v3867_v40 = vcombine.low %v670_v8, %v674_v32  ;;  %v733_v32 = vld [vmem:[#allocation7 + $0x790] sm:$0xff] }
 0x1db   : > { %2228 = vmatpush1.bf16.msra.mxu0 %v3801_v54  ;;  %v681_v54 = vld [vmem:[#allocation7 + $0x5f0] sm:$0xff] }
 0x1dc   : > { %2314 = vmatpush1.bf16.msra.mxu1 %v3803_v36  ;;  %2229 = vmatprep.subr.bf16.mxu0 %v3810_v38  ;;  %v678_v36 = vld [vmem:[#allocation7 + $0x5d8] sm:$0xff]  ;;  %v3874_v42 = vcombine.high %v677_v35, %v681_v54 }
 0x1dd   : > { %2315 = vmatprep.subr.bf16.mxu1 %v3812_v39  ;;  %v682_v38 = vld [vmem:[#allocation7 + $0x5f8] sm:$0xff]  ;;  %v3865_v39 = vcombine.low %v669_v30, %v673_v31 }
 0x1de   : > { %v3876_v43 = vcombine.high %v678_v36, %v682_v38  ;;  %v3875_v15 = vcombine.low %v678_v36, %v682_v38  ;;  %v741_v38 = vld [vmem:[#allocation7 + $0x7d0] sm:$0xff] }
 0x1df   : > { %2230 = vmatpush1.bf16.msra.mxu0 %v3809_v45  ;;  %v689_v45 = vld [vmem:[#allocation7 + $0x630] sm:$0xff] }
 0x1e0   : > { %2316 = vmatpush1.bf16.msra.mxu1 %v3811_v46  ;;  %2242 = vmatprep.subr.bf16.mxu0 %v3818_v13  ;;  %v686_v46 = vld [vmem:[#allocation7 + $0x618] sm:$0xff]  ;;  %v3882_v17 = vcombine.high %v685_v44, %v689_v45  ;;  %v3881_v51 = vcombine.low %v685_v44, %v689_v45 }
 0x1e1   : > { %2328 = vmatprep.subr.bf16.mxu1 %v3820_v14  ;;  %v690_v13 = vld [vmem:[#allocation7 + $0x638] sm:$0xff]  ;;  %v3873_v14 = vcombine.low %v677_v35, %v681_v54 }
 0x1e2   : > { %2232 = vmatmul.mubr.bf16.vlgmr.msra.gmra.mrb[4].mxu0 %v4784_v10  ;;  %v3883_v52 = vcombine.low %v686_v46, %v690_v13 }
 0x1e3   : > { %2318 = vmatmul.mubr.bf16.vlgmr.msra.gmra.mrb[4].mxu1 %v4784_v10  ;;  %2243 = vmatpush1.bf16.msra.mxu0 %v3817_v19  ;;  %v3835_v10 = vcombine.low %v638_v55, %v642_v56  ;;  %v3884_v19 = vcombine.high %v686_v46, %v690_v13  ;;  %v701_v56 = vld [vmem:[#allocation7 + $0x690] sm:$0xff] }
 0x1e4   : > { %2274 = vmatprep.mubr.bf16.mxu0 %v4792_v37  ;;  %2329 = vmatpush1.bf16.msra.mxu1 %v3819_v48  ;;  %v694_v48 = vld [vmem:[#allocation7 + $0x658] sm:$0xff] }
 0x1e5   : > { %2360 = vmatprep.mubr.bf16.mxu1 %v4792_v37  ;;  %2244 = vmatprep.subr.bf16.mxu0 %v3826_v49  ;;  %v3841_v37 = vcombine.low %v645_v7, %v649_v62  ;;  %v698_v49 = vld [vmem:[#allocation7 + $0x678] sm:$0xff] }
 0x1e6   : > { %2330 = vmatprep.subr.bf16.mxu1 %v3828_v53  ;;  %v3890_v53 = vcombine.high %v693_v20, %v697_v47  ;;  %v3892_v55 = vcombine.high %v694_v48, %v698_v49  ;;  %v3891_v7 = vcombine.low %v694_v48, %v698_v49 }
 0x1e7   : > { %2245 = vmatpush1.bf16.msra.mxu0 %v3825_v57  ;;  %v705_v57 = vld [vmem:[#allocation7 + $0x6b0] sm:$0xff] }
 0x1e8   : > { %2331 = vmatpush1.bf16.msra.mxu1 %v3827_v58  ;;  %2246 = vmatprep.subr.bf16.mxu0 %v3834_v59  ;;  %v702_v58 = vld [vmem:[#allocation7 + $0x698] sm:$0xff]  ;;  %v3898_v62 = vcombine.high %v701_v56, %v705_v57 }
 0x1e9   : > { %2332 = vmatprep.subr.bf16.mxu1 %v3836_v60  ;;  %v706_v59 = vld [vmem:[#allocation7 + $0x6b8] sm:$0xff]  ;;  %v3889_v60 = vcombine.low %v693_v20, %v697_v47 }
 0x1ea   : > { %v3900_v63 = vcombine.high %v702_v58, %v706_v59  ;;  %v3899_v12 = vcombine.low %v702_v58, %v706_v59 }
 0x1eb   : > { %2247 = vmatpush1.bf16.msra.mxu0 %v3833_v5  ;;  %v713_v5 = vld [vmem:[#allocation7 + $0x6f0] sm:$0xff] }
 0x1ec   : > { %2333 = vmatpush1.bf16.msra.mxu1 %v3835_v10  ;;  %2248 = vmatprep.subr.bf16.mxu0 %v3842_v6  ;;  %v710_v10 = vld [vmem:[#allocation7 + $0x6d8] sm:$0xff]  ;;  %v3906_v16 = vcombine.high %v709_v4, %v713_v5 }
 0x1ed   : > { %2334 = vmatprep.subr.bf16.mxu1 %v3844_v11  ;;  %v714_v6 = vld [vmem:[#allocation7 + $0x6f8] sm:$0xff]  ;;  %v3897_v11 = vcombine.low %v701_v56, %v705_v57 }
 0x1ee   : > { %v3908_v18 = vcombine.high %v710_v10, %v714_v6  ;;  %v3907_v23 = vcombine.low %v710_v10, %v714_v6 }
 0x1ef   : > { %2249 = vmatpush1.bf16.msra.mxu0 %v3841_v37  ;;  %v721_v37 = vld [vmem:[#allocation7 + $0x730] sm:$0xff] }
 0x1f0   : > { %2335 = vmatpush1.bf16.msra.mxu1 %v3843_v22  ;;  %2250 = vmatprep.subr.bf16.mxu0 %v3850_v2  ;;  %v718_v22 = vld [vmem:[#allocation7 + $0x718] sm:$0xff]  ;;  %v3914_v24 = vcombine.high %v717_v21, %v721_v37 }
 0x1f1   : > { %2336 = vmatprep.subr.bf16.mxu1 %v3852_v1  ;;  %v722_v2 = vld [vmem:[#allocation7 + $0x738] sm:$0xff]  ;;  %v3905_v1 = vcombine.low %v709_v4, %v713_v5 }
 0x1f2   : > { %v3916_v25 = vcombine.high %v718_v22, %v722_v2  ;;  %v3915_v30 = vcombine.low %v718_v22, %v722_v2 }
 0x1f3   : > { %2251 = vmatpush1.bf16.msra.mxu0 %v3849_v26  ;;  %v729_v26 = vld [vmem:[#allocation7 + $0x770] sm:$0xff] }
 0x1f4   : > { %2337 = vmatpush1.bf16.msra.mxu1 %v3851_v27  ;;  %2252 = vmatprep.subr.bf16.mxu0 %v3858_v28  ;;  %v726_v27 = vld [vmem:[#allocation7 + $0x758] sm:$0xff]  ;;  %v3922_v31 = vcombine.high %v725_v0, %v729_v26 }
 0x1f5   : > { %2338 = vmatprep.subr.bf16.mxu1 %v3860_v29  ;;  %v730_v28 = vld [vmem:[#allocation7 + $0x778] sm:$0xff]  ;;  %v3913_v29 = vcombine.low %v717_v21, %v721_v37 }
 0x1f6   : > { %v3924_v8 = vcombine.high %v726_v27, %v730_v28  ;;  %v3923_v35 = vcombine.low %v726_v27, %v730_v28 }
 0x1f7   : > { %2253 = vmatpush1.bf16.msra.mxu0 %v3857_v33  ;;  %v737_v33 = vld [vmem:[#allocation7 + $0x7b0] sm:$0xff] }
 0x1f8   : > { %2339 = vmatpush1.bf16.msra.mxu1 %v3859_v3  ;;  %2254 = vmatprep.subr.bf16.mxu0 %v3866_v50  ;;  %v734_v3 = vld [vmem:[#allocation7 + $0x798] sm:$0xff]  ;;  %v3930_v54 = vcombine.high %v733_v32, %v737_v33 }
 0x1f9   : > { %2340 = vmatprep.subr.bf16.mxu1 %v3868_v34  ;;  %v738_v50 = vld [vmem:[#allocation7 + $0x7b8] sm:$0xff]  ;;  %v3921_v34 = vcombine.low %v725_v0, %v729_v26 }
 0x1fa   : > { %v3932_v36 = vcombine.high %v734_v3, %v738_v50  ;;  %v3931_v44 = vcombine.low %v734_v3, %v738_v50 }
 0x1fb   : > { %2255 = vmatpush1.bf16.msra.mxu0 %v3865_v39  ;;  %v745_v39 = vld [vmem:[#allocation7 + $0x7f0] sm:$0xff] }
 0x1fc   : > { %2341 = vmatpush1.bf16.msra.mxu1 %v3867_v40  ;;  %2256 = vmatprep.subr.bf16.mxu0 %v3874_v42  ;;  %v742_v40 = vld [vmem:[#allocation7 + $0x7d8] sm:$0xff]  ;;  %v3938_v45 = vcombine.high %v741_v38, %v745_v39  ;;  %v3937_v13 = vcombine.low %v741_v38, %v745_v39 }
 0x1fd   : > { %2342 = vmatprep.subr.bf16.mxu1 %v3876_v43  ;;  %v746_v42 = vld [vmem:[#allocation7 + $0x7f8] sm:$0xff]  ;;  %v3929_v43 = vcombine.low %v733_v32, %v737_v33  ;;  %v5586_v33 = vmov 0.0  }
 0x1fe   : > { %v3940_v46 = vcombine.high %v742_v40, %v746_v42 }
 0x1ff   : > { %2257 = vmatpush1.bf16.msra.mxu0 %v3873_v14  ;;  %v3939_v14 = vcombine.low %v742_v40, %v746_v42 }
 0x200   : > { %2343 = vmatpush1.bf16.msra.mxu1 %v3875_v15  ;;  %2258 = vmatprep.subr.bf16.mxu0 %v3882_v17  ;;  %v4409_v15 = vmov 1983009808  }
 0x201   : > { %2344 = vmatprep.subr.bf16.mxu1 %v3884_v19  ;;  %v2374_v17 = vunpack.c.l.s4 %v4409_v15  ;;  %v4410_v19 = vmov 1934713408  }
 0x202   : > { %v2406_v20 = vunpack.c.l.s4 %v4410_v19 }
 0x203   : > { %2259 = vmatpush1.bf16.msra.mxu0 %v3881_v51  ;;  %v2375_v47 = vunpack.c.0.s8 %v2374_v17 }
 0x204   : > { %2345 = vmatpush1.bf16.msra.mxu1 %v3883_v52  ;;  %2260 = vmatprep.subr.bf16.mxu0 %v3890_v53  ;;  %v2407_v48 = vunpack.c.0.s8 %v2406_v20 }
 0x205   : > { %2346 = vmatprep.subr.bf16.mxu1 %v3892_v55  ;;  %v4813_v49 = vsub.s32 %v2375_v47, %v4739_v41 }
 0x206   : > { %v4816_v58 = vsub.s32 %v2407_v48, %v4739_v41 }
 0x207   : > { %2261 = vmatpush1.bf16.msra.mxu0 %v3889_v60 }
 0x208   : > { %2347 = vmatpush1.bf16.msra.mxu1 %v3891_v7  ;;  %2262 = vmatprep.subr.bf16.mxu0 %v3898_v62 }
 0x209   : > { %2348 = vmatprep.subr.bf16.mxu1 %v3900_v63 }
 0x20b   : > { %2263 = vmatpush1.bf16.msra.mxu0 %v3897_v11 }
 0x20c   : > { %2349 = vmatpush1.bf16.msra.mxu1 %v3899_v12  ;;  %2264 = vmatprep.subr.bf16.mxu0 %v3906_v16 }
 0x20d   : > { %2350 = vmatprep.subr.bf16.mxu1 %v3908_v18 }
 0x20f   : > { %2265 = vmatpush1.bf16.msra.mxu0 %v3905_v1 }
 0x210   : > { %2351 = vmatpush1.bf16.msra.mxu1 %v3907_v23  ;;  %2266 = vmatprep.subr.bf16.mxu0 %v3914_v24 }
 0x211   : > { %2352 = vmatprep.subr.bf16.mxu1 %v3916_v25 }
 0x213   : > { %2267 = vmatpush1.bf16.msra.mxu0 %v3913_v29 }
 0x214   : > { %2353 = vmatpush1.bf16.msra.mxu1 %v3915_v30  ;;  %2268 = vmatprep.subr.bf16.mxu0 %v3922_v31 }
 0x215   : > { %2354 = vmatprep.subr.bf16.mxu1 %v3924_v8 }
 0x217   : > { %2269 = vmatpush1.bf16.msra.mxu0 %v3921_v34 }
 0x218   : > { %2355 = vmatpush1.bf16.msra.mxu1 %v3923_v35  ;;  %2270 = vmatprep.subr.bf16.mxu0 %v3930_v54 }
 0x219   : > { %2356 = vmatprep.subr.bf16.mxu1 %v3932_v36 }
 0x21b   : > { %2271 = vmatpush1.bf16.msra.mxu0 %v3929_v43 }
 0x21c   : > { %2357 = vmatpush1.bf16.msra.mxu1 %v3931_v44  ;;  %2272 = vmatprep.subr.bf16.mxu0 %v3938_v45  ;;  %v4413_v44 = vmov 1966171168  }
 0x21d   : > { %2358 = vmatprep.subr.bf16.mxu1 %v3940_v46  ;;  %v2777_v45 = vunpack.c.l.s4 %v4413_v44 }
 0x21f   : > { %2273 = vmatpush1.bf16.msra.mxu0 %v3937_v13  ;;  %v2778_v46 = vunpack.c.0.s8 %v2777_v45  ;;  %v2771_v13 = vld [vmem:[#allocation8] sm:$0xff] }
 0x220   : > { %2359 = vmatpush1.bf16.msra.mxu1 %v3939_v14  ;;  %v2772_v14 = vld [vmem:[#allocation8 + $0x8] sm:$0xff]  ;;  %v2775_v17 = vcombine.high %v2771_v13, %v2771_v13 }
 0x221   : > { %v4915_v15 = vsub.s32 %v2778_v46, %v4739_v41  ;;  %v2824_v19 = vcombine.high %v2772_v14, %v2772_v14 }
 0x222   : > { %2275 = vmatmul.mubr.bf16.vlgmr.msra.gmra.mrb[4].mxu0 %v4786_v9 }
 0x223   : > { %2361 = vmatmul.mubr.bf16.vlgmr.msra.gmra.mrb[4].mxu1 %v4786_v9  ;;  %v2831_v20 = vrot.slane %v2772_v14, %v4915_v15  ;;  %v2782_v47 = vrot.slane %v2771_v13, %v4915_v15  ;;  %v2789_v48 = vrot.slane %v2775_v17, %v4915_v15 }
 0x225   : > { %v2805_v41 = vrot.slane %v2789_v48, %v4915_v15 }
 0x275   : > { %v2104_v51 = vpop.f32.mrb[0].mxu0  ;;  %v2190_v52 = vpop.f32.mrb[0].mxu1 }
 0x276   : > { %v2371_v53 = vcombine.low %v2104_v51, %v2190_v52  ;;  %v2372_v55 = vcombine.high %v2104_v51, %v2190_v52  ;;  %v2106_v56 = vpop.f32.mrb[1].mxu0  ;;  %v2192_v57 = vpop.f32.mrb[1].mxu1  ;;  %v2838_v51 = vrot.slane %v2824_v19, %v4915_v15  ;;  %v2839_v52 = vcombine.high %v2831_v20, %v2831_v20 }
 0x277   : > { %v2387_v59 = vcombine.low %v2106_v56, %v2192_v57  ;;  %v2388_v9 = vcombine.high %v2106_v56, %v2192_v57  ;;  %v2108_v60 = vpop.f32.mrb[2].mxu0  ;;  %v2194_v7 = vpop.f32.mrb[2].mxu1  ;;  %v2790_v56 = vcombine.high %v2782_v47, %v2782_v47  ;;  %v2874_v57 = vld [vmem:[#allocation10 + $0x8] sm:$0xff] }
 0x278   : > { %v2379_v62 = vrot.slane %v2371_v53, %v4813_v49  ;;  %v2386_v63 = vrot.slane %v2372_v55, %v4813_v49  ;;  %v2439_v4 = vcombine.low %v2108_v60, %v2194_v7  ;;  %v2440_v5 = vcombine.high %v2108_v60, %v2194_v7  ;;  %v2110_v10 = vpop.f32.mrb[3].mxu0  ;;  %v2196_v6 = vpop.f32.mrb[3].mxu1  ;;  %v2873_v55 = vld [vmem:[#allocation10] sm:$0xff] }
 0x279   : > { %v2395_v11 = vrot.slane %v2387_v59, %v4813_v49  ;;  %v2402_v12 = vrot.slane %v2388_v9, %v4813_v49  ;;  %v2455_v16 = vcombine.low %v2110_v10, %v2196_v6  ;;  %v2456_v18 = vcombine.high %v2110_v10, %v2196_v6 }
 0x27a   : > { %v2447_v21 = vrot.slane %v2439_v4, %v4813_v49  ;;  %v2454_v37 = vrot.slane %v2440_v5, %v4813_v49  ;;  %v2798_v53 = vrot.slane %v2782_v47, %v4915_v15  ;;  %v2840_v59 = vcombine.high %v2838_v51, %v2838_v51 }
 0x27b   : > { %v2403_v22 = vcombine.low %v2379_v62, %v2395_v11  ;;  %v2404_v2 = vcombine.high %v2379_v62, %v2395_v11  ;;  %v2419_v1 = vcombine.low %v2386_v63, %v2402_v12  ;;  %v2420_v23 = vcombine.high %v2386_v63, %v2402_v12 }
 0x27c   : > { %v2463_v24 = vrot.slane %v2455_v16, %v4813_v49  ;;  %v2470_v25 = vrot.slane %v2456_v18, %v4813_v49  ;;  %v2791_v9 = vcombine.high %v2789_v48, %v2789_v48  ;;  %v2884_v60 = vrot.slane %v2873_v55, %v4915_v15 }
 0x27d   : > { %v4827_v0 = vrot.slane %v2404_v2, %v4816_v58  ;;  %v4830_v26 = vrot.slane %v2403_v22, %v4816_v58  ;;  %v4840_v8 = vrot.slane %v2419_v1, %v4816_v58  ;;  %v4854_v50 = vrot.slane %v2420_v23, %v4816_v58 }
 0x27e   : > { %v2471_v27 = vcombine.low %v2447_v21, %v2463_v24  ;;  %v2472_v28 = vcombine.high %v2447_v21, %v2463_v24  ;;  %v2487_v29 = vcombine.low %v2454_v37, %v2470_v25  ;;  %v2488_v30 = vcombine.high %v2454_v37, %v2470_v25 }
 0x27f   : > { %3075 = vrot.lane.b32.xlu0 %v4827_v0, %s4411_s9  ;;  %3071 = vrot.lane.b32.xlu1 %v4830_v26, %s4411_s9  ;;  %v4869_v54 = vcombine.high %v4830_v26, %v5586_v33  ;;  %v4884_v39 = vcombine.high %v4827_v0, %v5586_v33  ;;  %v4896_v42 = vcombine.high %v4840_v8, %v5586_v33 }
 0x280   : > { %v4837_v31 = vrot.slane %v2471_v27, %v4816_v58  ;;  %v4843_v32 = vrot.slane %v2472_v28, %v4816_v58  ;;  %v4857_v34 = vrot.slane %v2487_v29, %v4816_v58  ;;  %v4872_v36 = vrot.slane %v2488_v30, %v4816_v58 }
 0x281   : > { %v4902_v43 = vcombine.high %v4854_v50, %v5586_v33  ;;  %v2861_v7 = vrot.slane %v2839_v52, %v4915_v15  ;;  %v2820_v62 = vcombine.high %v2798_v53, %v2798_v53  ;;  %v2877_v63 = vcombine.high %v2873_v55, %v2873_v55 }
 0x282   : > { %v4847_v3 = vcombine.high %v4837_v31, %v5586_v33  ;;  %v4861_v35 = vcombine.high %v4843_v32, %v5586_v33  ;;  %v4876_v38 = vcombine.high %v4857_v34, %v5586_v33  ;;  %v4888_v40 = vcombine.high %v4872_v36, %v5586_v33 }
 0x283   : > { %3079 = vrot.lane.b32.xlu1 %v4840_v8, %s4411_s9  ;;  %v4926_v4 = vrot.slane %v2874_v57, %v4915_v15  ;;  %v2812_v5 = vrot.slane %v2790_v56, %v4915_v15  ;;  %v2868_v10 = vrot.slane %v2840_v59, %v4915_v15  ;;  %v2819_v6 = vrot.slane %v2791_v9, %v4915_v15 }
 0x284   : > { %3089 = vrot.lane.b32.xlu0 %v4847_v3, %s4411_s9  ;;  %v2821_v11 = vcombine.high %v2805_v41, %v2805_v41  ;;  %v2926_v12 = vcombine.high %v2874_v57, %v2874_v57  ;;  %v2847_v16 = vrot.slane %v2831_v20, %v4915_v15  ;;  %v2900_v18 = vrot.slane %v2884_v60, %v4915_v15 }
 0x285   : > { %v2871_v21 = vcombine.high %v2861_v7, %v2861_v7  ;;  %v2854_v37 = vrot.slane %v2838_v51, %v4915_v15  ;;  %v4935_v22 = vrot.slane %v2820_v62, %v4765_v61  ;;  %v2891_v2 = vrot.slane %v2877_v63, %v4915_v15 }
 0x286   : > { %v2941_v1 = vcombine.high %v4926_v4, %v4926_v4  ;;  %v2822_v23 = vcombine.high %v2812_v5, %v2812_v5  ;;  %v4941_v24 = vrot.slane %v2798_v53, %v4765_v61  ;;  %v4944_v25 = vrot.slane %v2805_v41, %v4765_v61 }
 0x287   : > { %3083 = vrot.lane.b32.xlu1 %v4854_v50, %s4411_s9  ;;  %v2872_v27 = vcombine.high %v2868_v10, %v2868_v10  ;;  %v2823_v28 = vcombine.high %v2819_v6, %v2819_v6  ;;  %v4947_v29 = vrot.slane %v2861_v7, %v4765_v61  ;;  %v4950_v30 = vrot.slane %v2821_v11, %v4765_v61 }
 0x288   : > { %3093 = vrot.lane.b32.xlu0 %v4861_v35, %s4411_s9  ;;  %5619 = vst [vmem:[#allocation21_spill] sm:$0xff] %v4944_v25  ;;  %v4953_v44 = vrot.slane %v2926_v12, %v4915_v15  ;;  %v2869_v45 = vcombine.high %v2847_v16, %v2847_v16  ;;  %v2922_v46 = vcombine.high %v2900_v18, %v2900_v18 }
 0x289   : > { %5620 = vst [vmem:[#allocation22_spill] sm:$0xff] %v4947_v29  ;;  %5621 = vst [vmem:[#allocation23_spill] sm:$0xff] %v4950_v30  ;;  %v4956_v13 = vrot.slane %v2871_v21, %v4765_v61  ;;  %v4959_v14 = vrot.slane %v2812_v5, %v4765_v61  ;;  %v2870_v17 = vcombine.high %v2854_v37, %v2854_v37 }
 0x28a   : > { %v2907_v19 = vrot.slane %v2891_v2, %v4915_v15  ;;  %v2963_v20 = vrot.slane %v2941_v1, %v4915_v15  ;;  %v4964_v47 = vrot.slane %v2868_v10, %v4765_v61  ;;  %v4967_v48 = vrot.slane %v2822_v23, %v4765_v61 }
 0x28b   : > { %3073 = vrot.lane.b32.xlu1 %v4869_v54, %s4411_s9  ;;  %5622 = vst [vmem:[#allocation24_spill] sm:$0xff] %v4956_v13  ;;  %v2892_v51 = vcombine.high %v2884_v60, %v2884_v60  ;;  %v4970_v52 = vrot.slane %v2872_v27, %v4765_v61  ;;  %v4973_v53 = vrot.slane %v2819_v6, %v4765_v61 }
 0x28c   : > { %3097 = vrot.lane.b32.xlu0 %v4876_v38, %s4411_s9  ;;  %5623 = vst [vmem:[#allocation25_spill] sm:$0xff] %v4964_v47  ;;  %5624 = vst [vmem:[#allocation26_spill] sm:$0xff] %v4967_v48  ;;  %v4976_v55 = vrot.slane %v2823_v28, %v4765_v61  ;;  %v2942_v56 = vcombine.high %v4953_v44, %v4953_v44  ;;  %v4981_v57 = vrot.slane %v2847_v16, %v4765_v61 }
 0x28d   : > { %5625 = vst [vmem:[#allocation27_spill] sm:$0xff] %v4970_v52  ;;  %5626 = vst [vmem:[#allocation28_spill] sm:$0xff] %v4973_v53  ;;  %v4984_v59 = vrot.slane %v2869_v45, %v4765_v61  ;;  %v4987_v9 = vrot.slane %v2854_v37, %v4765_v61  ;;  %v4990_v41 = vrot.slane %v2922_v46, %v4765_v61 }
 0x28e   : > { %5627 = vst [vmem:[#allocation29_spill] sm:$0xff] %v4976_v55  ;;  %5628 = vst [vmem:[#allocation30_spill] sm:$0xff] %v4981_v57  ;;  %v4993_v60 = vrot.slane %v2900_v18, %v4765_v61  ;;  %v2893_v7 = vcombine.high %v2891_v2, %v2891_v2  ;;  %v4996_v62 = vrot.slane %v2870_v17, %v4765_v61 }
 0x28f   : > { %3077 = vrot.lane.b32.xlu1 %v4884_v39, %s4411_s9  ;;  %5629 = vst [vmem:[#allocation31_spill] sm:$0xff] %v4984_v59  ;;  %5630 = vst [vmem:[#allocation32_spill] sm:$0xff] %v4990_v41  ;;  %v4999_v63 = vrot.slane %v2907_v19, %v4765_v61  ;;  %v5002_v5 = vrot.slane %v2963_v20, %v4765_v61  ;;  %v2923_v10 = vcombine.high %v2907_v19, %v2907_v19 }
 0x290   : > { %3101 = vrot.lane.b32.xlu0 %v4888_v40, %s4411_s9  ;;  %v2973_v6 = vcombine.high %v2963_v20, %v2963_v20  ;;  %v3057_v11 = vmul.f32 %v4935_v22, %v4827_v0  ;;  %v3055_v12 = vmul.f32 %v4941_v24, %v4830_v26  ;;  %v3059_v16 = vmul.f32 %v4944_v25, %v4840_v8 }
 0x291   : > { %5631 = vst [vmem:[#allocation33_spill] sm:$0xff] %v4999_v63  ;;  %5632 = vst [vmem:[#allocation34_spill] sm:$0xff] %v5002_v5  ;;  %v2914_v18 = vrot.slane %v2892_v51, %v4915_v15  ;;  %v3064_v21 = vmul.f32 %v4947_v29, %v4847_v3  ;;  %v5015_v37 = vmul.f32 %v4950_v30, %v4854_v50 }
 0x292   : > { %v5019_v2 = vmul.f32 %v4959_v14, %v4869_v54  ;;  %v2970_v0 = vrot.slane %v2942_v56, %v4915_v15  ;;  %v5024_v26 = vmul.f32 %v4956_v13, %v4861_v35  ;;  %v5028_v8 = vmul.f32 %v4964_v47, %v4876_v38 }
 0x293   : > { %3081 = vrot.lane.b32.xlu1 %v4896_v42, %s4411_s9  ;;  %v2924_v1 = vcombine.high %v2914_v18, %v2914_v18  ;;  %v2921_v3 = vrot.slane %v2893_v7, %v4915_v15  ;;  %v5032_v50 = vrot.slane %v2923_v10, %v4765_v61  ;;  %v5035_v23 = vrot.slane %v2973_v6, %v4765_v61 }
 0x294   : > { %v5039_v54 = vmul.f32 %v4967_v48, %v4884_v39  ;;  %v2974_v35 = vcombine.high %v2970_v0, %v2970_v0  ;;  %v5043_v38 = vmul.f32 %v4970_v52, %v4888_v40  ;;  %v5047_v45 = vmul.f32 %v4973_v53, %v4896_v42 }
 0x295   : > { %v2925_v46 = vcombine.high %v2921_v3, %v2921_v3  ;;  %v5051_v17 = vrot.slane %v4926_v4, %v4915_v15  ;;  %v5057_v20 = vmul.f32 %v4976_v55, %v4902_v43  ;;  %v5061_v40 = vmul.f32 %v4981_v57, %v4837_v31 }
 0x296   : > { %v5064_v42 = vrot.slane %v2914_v18, %v4765_v61  ;;  %v5067_v51 = vrot.slane %v2970_v0, %v4765_v61  ;;  %v5070_v4 = vrot.slane %v2924_v1, %v4765_v61  ;;  %v5074_v56 = vmul.f32 %v4984_v59, %v4843_v32 }
 0x297   : > { %3085 = vrot.lane.b32.xlu1 %v4902_v43, %s4411_s9  ;;  %v5078_v10 = vrot.slane %v2974_v35, %v4765_v61  ;;  %v5084_v0 = vrot.slane %v2925_v46, %v4765_v61  ;;  %v5088_v1 = vrot.slane %v5051_v17, %v4765_v61 }
 0x29b   : > { %3087 = vrot.lane.b32.xlu1 %v4837_v31, %s4411_s9  ;;  %v5081_v31 = vrot.slane %v2921_v3, %v4765_v61 }
 0x29f   : > { %3091 = vrot.lane.b32.xlu1 %v4843_v32, %s4411_s9 }
 0x2a3   : > { %3095 = vrot.lane.b32.xlu1 %v4857_v34, %s4411_s9 }
 0x2a7   : > { %3099 = vrot.lane.b32.xlu1 %v4872_v36, %s4411_s9 }
 0x2f1   : > { %v3076_v27 = vpop.permute.xlu0 %3075  ;;  %v3072_v28 = vpop.permute.xlu1 %3071 }
 0x2f2   : > { %v3185_v39 = vmul.f32 %v4990_v41, %v3076_v27  ;;  %v3183_v19 = vmul.f32 %v4993_v60, %v3072_v28 }
 0x2f4   : > { %v3201_v43 = vadd.f32 %v3185_v39, %v3057_v11  ;;  %v3199_v7 = vadd.f32 %v3183_v19, %v3055_v12  ;;  %v5094_v11 = vrot.slane %v4953_v44, %v4915_v15 }
 0x2f5   : > { %v3080_v6 = vpop.permute.xlu1 %3079  ;;  %v2276_v18 = vpop.f32.mrb[4].mxu0 }
 0x2f6   : > { %v3217_v12 = vmul.f32 0.088388346, %v3201_v43  ;;  %v3215_v35 = vmul.f32 0.088388346, %v3199_v7  ;;  %v2362_v3 = vpop.f32.mrb[4].mxu1  ;;  %v3187_v27 = vmul.f32 %v4999_v63, %v3080_v6  ;;  %v3090_v28 = vpop.permute.xlu0 %3089  ;;  %v2507_v46 = vcombine.high %v2276_v18, %v5586_v33 }
 0x2f7   : > { %v2639_v39 = vcombine.high %v2362_v3, %v5586_v33  ;;  %v2646_v19 = vrot.slane %v2362_v3, %v4813_v49  ;;  %v3192_v52 = vmul.f32 %v5002_v5, %v3090_v28  ;;  %v5102_v32 = vrot.slane %v2276_v18, %v4813_v49  ;;  %v2278_v15 = vpop.f32.mrb[5].mxu0  ;;  %v2364_v44 = vpop.f32.mrb[5].mxu1 }
 0x2f8   : > { %v3233_v43 = vpack.c.bf16 %v3217_v12, %v3217_v12  ;;  %v3231_v7 = vpack.c.bf16 %v3215_v35, %v3215_v35  ;;  %v3203_v47 = vadd.f32 %v3187_v27, %v3059_v16  ;;  %v5105_v6 = vrot.slane %v2507_v46, %v4813_v49  ;;  %v2280_v13 = vpop.f32.mrb[6].mxu0  ;;  %v2366_v59 = vpop.f32.mrb[6].mxu1 }
 0x2f9   : > { %v2653_v33 = vrot.slane %v2639_v39, %v4813_v49  ;;  %v3208_v29 = vadd.f32 %v3192_v52, %v3064_v21  ;;  %v5633_v3 = vmov 0.0   ;;  %v5110_v28 = vrot.slane %v2278_v15, %v4813_v49  ;;  %v2282_v18 = vpop.f32.mrb[7].mxu0  ;;  %v5112_v5 = vpop.f32.mrb[7].mxu1 }
 0x2fa   : > { %v2522_v57 = vcombine.high %v2278_v15, %v5633_v3  ;;  %3249 = vst [vmem:[%s5116_s15 + $0x4] sm:$0x3] %v3233_v43  ;;  %3247 = vst [vmem:[%s5116_s15] sm:$0x3] %v3231_v7  ;;  %v3219_v16 = vmul.f32 0.088388346, %v3203_v47  ;;  %v2654_v12 = vcombine.high %v2364_v44, %v5633_v3  ;;  %v2661_v52 = vrot.slane %v2364_v44, %v4813_v49  ;;  %v3084_v35 = vpop.permute.xlu1 %3083  ;;  %v3094_v39 = vpop.permute.xlu0 %3093 }
 0x2fb   : > { %v2573_v21 = vcombine.high %v2280_v13, %v5633_v3  ;;  %v3224_v27 = vmul.f32 0.088388346, %v3208_v29  ;;  %v2712_v29 = vrot.slane %v2366_v59, %v4813_v49  ;;  %v5155_v30 = vrot.slane %v2282_v18, %v4813_v49 }
 0x2fc   : > { %v5124_v46 = vrot.slane %v2522_v57, %v4813_v49  ;;  %v3235_v47 = vpack.c.bf16 %v3219_v16, %v3219_v16  ;;  %v2668_v43 = vrot.slane %v2654_v12, %v4813_v49  ;;  %v2669_v7 = vcombine.low %v2646_v19, %v2661_v52 }
 0x2fd   : > { %v2670_v44 = vcombine.high %v2646_v19, %v2661_v52  ;;  %v3240_v55 = vpack.c.bf16 %v3224_v27, %v3224_v27  ;;  %v5137_v57 = vrot.slane %v2280_v13, %v4813_v49  ;;  %v5144_v52 = vrot.slane %v2573_v21, %v4813_v49 }
 0x2fe   : > { %3251 = vst [vmem:[%s5116_s15 + $0x8] sm:$0x3] %v3235_v47  ;;  %v2677_v16 = vrot.slane %v2669_v7, %v4816_v58  ;;  %v2685_v12 = vcombine.low %v2653_v33, %v2668_v43  ;;  %v2686_v53 = vcombine.high %v2653_v33, %v2668_v43  ;;  %v3074_v19 = vpop.permute.xlu1 %3073  ;;  %v2705_v27 = vcombine.high %v2366_v59, %v5633_v3 }
 0x2ff   : > { %v2684_v15 = vrot.slane %v2670_v44, %v4816_v58  ;;  %3256 = vst [vmem:[%s5116_s15 + $0x12] sm:$0x3] %v3240_v55  ;;  %v2588_v13 = vcombine.high %v2282_v18, %v5633_v3 }
 0x300   : > { %v2693_v47 = vrot.slane %v2685_v12, %v4816_v58  ;;  %v2700_v7 = vrot.slane %v2686_v53, %v4816_v58  ;;  %v2701_v44 = vcombine.high %v2677_v16, %v5633_v3  ;;  %v3375_v43 = vpack.c.bf16 %v2677_v16, %v2677_v16  ;;  %v3098_v16 = vpop.permute.xlu0 %3097 }
 0x301   : > { %v2702_v33 = vcombine.high %v2684_v15, %v5633_v3  ;;  %v3377_v55 = vpack.c.bf16 %v2684_v15, %v2684_v15  ;;  %v2719_v21 = vrot.slane %v2705_v27, %v4813_v49  ;;  %v5168_v18 = vrot.slane %v2588_v13, %v4813_v49 }
 0x302   : > { %v2703_v59 = vcombine.high %v2693_v47, %v5633_v3  ;;  %v2704_v63 = vcombine.high %v2700_v7, %v5633_v3  ;;  %v3376_v25 = vpack.c.bf16 %v2701_v44, %v2701_v44  ;;  %v5159_v12 = vpop.permute.xlu1 %3077  ;;  %v3379_v53 = vpack.c.bf16 %v2693_v47, %v2693_v47  ;;  %3391 = vst [vmem:[%s5163_s8] sm:$0x1] %v3375_v43 }
 0x303   : > { %v3378_v48 = vpack.c.bf16 %v2702_v33, %v2702_v33  ;;  %v3381_v41 = vpack.c.bf16 %v2700_v7, %v2700_v7  ;;  %3393 = vst [vmem:[%s5163_s8 + $0x2] sm:$0x1] %v3377_v55  ;;  %v2603_v15 = vcombine.low %v5137_v57, %v5155_v30  ;;  %v2604_v7 = vcombine.high %v5137_v57, %v5155_v30 }
 0x304   : > { %v3380_v27 = vpack.c.bf16 %v2703_v59, %v2703_v59  ;;  %v3382_v47 = vpack.c.bf16 %v2704_v63, %v2704_v63  ;;  %3392 = vst [vmem:[%s5163_s8 + $0x1] sm:$0x1] %v3376_v25  ;;  %v2720_v44 = vcombine.high %v5112_v5, %v5633_v3  ;;  %3395 = vst [vmem:[%s5163_s8 + $0x4] sm:$0x1] %v3379_v53 }
 0x305   : > { %3394 = vst [vmem:[%s5163_s8 + $0x3] sm:$0x1] %v3378_v48  ;;  %3397 = vst [vmem:[%s5163_s8 + $0x6] sm:$0x1] %v3381_v41  ;;  %v2727_v43 = vrot.slane %v5112_v5, %v4813_v49  ;;  %v3189_v25 = vmul.f32 %v5032_v50, %v3084_v35  ;;  %v3194_v63 = vmul.f32 %v5035_v23, %v3094_v39 }
 0x306   : > { %3396 = vst [vmem:[%s5163_s8 + $0x5] sm:$0x1] %v3380_v27  ;;  %3398 = vst [vmem:[%s5163_s8 + $0x7] sm:$0x1] %v3382_v47  ;;  %v2734_v48 = vrot.slane %v2720_v44, %v4813_v49  ;;  %v3184_v55 = vmul.f32 %v5064_v42, %v3074_v19  ;;  %v3196_v41 = vmul.f32 %v5067_v51, %v3098_v16  ;;  %v3082_v59 = vpop.permute.xlu1 %3081 }
 0x307   : > { %v2735_v53 = vcombine.low %v2712_v29, %v2727_v43  ;;  %v2736_v13 = vcombine.high %v2712_v29, %v2727_v43  ;;  %v3205_v33 = vadd.f32 %v3189_v25, %v5015_v37  ;;  %v5634_v5 = vcombine.low %v5102_v32, %v5110_v28 }
 0x308   : > { %v2751_v27 = vcombine.low %v2719_v21, %v2734_v48  ;;  %v2752_v47 = vcombine.high %v2719_v21, %v2734_v48  ;;  %v3210_v49 = vadd.f32 %v3194_v63, %v5024_v26  ;;  %v3200_v39 = vadd.f32 %v3184_v55, %v5019_v2 }
 0x309   : > { %v5198_v35 = vrot.slane %v5634_v5, %v4816_v58  ;;  %v2743_v19 = vrot.slane %v2735_v53, %v4816_v58  ;;  %v2750_v16 = vrot.slane %v2736_v13, %v4816_v58  ;;  %v3221_v44 = vmul.f32 0.088388346, %v3205_v33  ;;  %v3102_v53 = vpop.permute.xlu0 %3101 }
 0x30a   : > { %v3212_v29 = vadd.f32 %v3196_v41, %v5028_v8  ;;  %v2759_v37 = vrot.slane %v2751_v27, %v4816_v58  ;;  %v2766_v43 = vrot.slane %v2752_v47, %v4816_v58  ;;  %v3226_v21 = vmul.f32 0.088388346, %v3210_v49  ;;  %v3086_v25 = vpop.permute.xlu1 %3085 }
 0x30b   : > { %3279 = vrot.lane.b32.xlu1 %v5198_v35, %s4411_s9  ;;  %v3216_v26 = vmul.f32 0.088388346, %v3200_v39  ;;  %v2767_v2 = vcombine.high %v2743_v19, %v5633_v3  ;;  %v2768_v48 = vcombine.high %v2750_v16, %v5633_v3  ;;  %v3383_v13 = vpack.c.bf16 %v2743_v19, %v2743_v19 }
 0x30c   : > { %v3385_v8 = vpack.c.bf16 %v2750_v16, %v2750_v16  ;;  %v2769_v33 = vcombine.high %v2759_v37, %v5633_v3  ;;  %v2770_v63 = vcombine.high %v2766_v43, %v5633_v3  ;;  %v3387_v55 = vpack.c.bf16 %v2759_v37, %v2759_v37 }
 0x30d   : > { %v3389_v41 = vpack.c.bf16 %v2766_v43, %v2766_v43  ;;  %v3384_v5 = vpack.c.bf16 %v2767_v2, %v2767_v2  ;;  %v3386_v27 = vpack.c.bf16 %v2768_v48, %v2768_v48  ;;  %3399 = vst [vmem:[%s5163_s8 + $0x8] sm:$0x1] %v3383_v13  ;;  %v3237_v47 = vpack.c.bf16 %v3221_v44, %v3221_v44 }
 0x30e   : > { %3401 = vst [vmem:[%s5163_s8 + $0xa] sm:$0x1] %v3385_v8  ;;  %v3242_v49 = vpack.c.bf16 %v3226_v21, %v3226_v21  ;;  %v3388_v39 = vpack.c.bf16 %v2769_v33, %v2769_v33  ;;  %v3390_v19 = vpack.c.bf16 %v2770_v63, %v2770_v63  ;;  %3403 = vst [vmem:[%s5163_s8 + $0xc] sm:$0x1] %v3387_v55  ;;  %v3228_v37 = vmul.f32 0.088388346, %v3212_v29  ;;  %v3088_v43 = vpop.permute.xlu1 %3087 }
 0x30f   : > { %3405 = vst [vmem:[%s5163_s8 + $0xe] sm:$0x1] %v3389_v41  ;;  %v3232_v16 = vpack.c.bf16 %v3216_v26, %v3216_v26  ;;  %3400 = vst [vmem:[%s5163_s8 + $0x9] sm:$0x1] %v3384_v5  ;;  %v5223_v2 = vcombine.high %v5198_v35, %v5633_v3  ;;  %v3186_v44 = vmul.f32 %v5070_v4, %v5159_v12 }
 0x310   : > { %3402 = vst [vmem:[%s5163_s8 + $0xb] sm:$0x1] %v3386_v27  ;;  %3253 = vst [vmem:[%s5116_s15 + $0xc] sm:$0x3] %v3237_v47  ;;  %v3198_v21 = vmul.f32 %v5078_v10, %v3102_v53  ;;  %v5635_v26 = vcombine.high %v5102_v32, %v5110_v28  ;;  %v3244_v48 = vpack.c.bf16 %v3228_v37, %v3228_v37 }
 0x311   : > { %3258 = vst [vmem:[%s5116_s15 + $0x16] sm:$0x3] %v3242_v49  ;;  %3404 = vst [vmem:[%s5163_s8 + $0xd] sm:$0x1] %v3388_v39  ;;  %v3188_v13 = vmul.f32 %v5081_v31, %v3082_v59  ;;  %v3190_v8 = vmul.f32 %v5084_v0, %v3086_v25  ;;  %v5636_v12 = vcombine.high %v5051_v17, %v5051_v17  ;;  %3281 = vrot.lane.b32.xlu0 %v5223_v2, %s4411_s9 }
 0x312   : > { %v5232_v29 = vrot.slane %v5635_v26, %v4816_v58  ;;  %3406 = vst [vmem:[%s5163_s8 + $0xf] sm:$0x1] %v3390_v19  ;;  %3248 = vst [vmem:[%s5116_s15 + $0x2] sm:$0x3] %v3232_v16  ;;  %v3202_v32 = vadd.f32 %v3186_v44, %v5039_v54  ;;  %v3214_v28 = vadd.f32 %v3198_v21, %v5043_v38  ;;  %v3092_v55 = vpop.permute.xlu1 %3091 }
 0x313   : > { %v5243_v33 = vrot.slane %v5636_v12, %v4765_v61  ;;  %v5253_v59 = vrot.slane %v5094_v11, %v4765_v61  ;;  %3260 = vst [vmem:[%s5116_s15 + $0x1a] sm:$0x3] %v3244_v48  ;;  %v3204_v25 = vadd.f32 %v3188_v13, %v5047_v45  ;;  %v5637_v17 = vcombine.low %v5105_v6, %v5124_v46 }
 0x314   : > { %3283 = vrot.lane.b32.xlu1 %v5232_v29, %s4411_s9  ;;  %v3206_v54 = vadd.f32 %v3190_v8, %v5057_v20  ;;  %v2972_v38 = vcombine.high %v5094_v11, %v5094_v11  ;;  %v3218_v41 = vmul.f32 0.088388346, %v3202_v32  ;;  %v3230_v53 = vmul.f32 0.088388346, %v3214_v28 }
 0x315   : > { %v5261_v63 = vrot.slane %v5637_v17, %v4816_v58  ;;  %v5268_v5 = vcombine.high %v5232_v29, %v5633_v3  ;;  %v3191_v45 = vmul.f32 %v5088_v1, %v3088_v43  ;;  %v3220_v27 = vmul.f32 0.088388346, %v3204_v25 }
 0x316   : > { %v3222_v47 = vmul.f32 0.088388346, %v3206_v54  ;;  %v3193_v49 = vmul.f32 %v5243_v33, %v3092_v55  ;;  %v3067_v20 = vmul.f32 %v4987_v9, %v4857_v34  ;;  %v3234_v39 = vpack.c.bf16 %v3218_v41, %v3218_v41  ;;  %v3096_v44 = vpop.permute.xlu1 %3095 }
 0x317   : > { %v3246_v11 = vpack.c.bf16 %v3230_v53, %v3230_v53  ;;  %3285 = vrot.lane.b32.xlu0 %v5268_v5, %s4411_s9  ;;  %v3207_v19 = vadd.f32 %v3191_v45, %v5061_v40  ;;  %v3236_v16 = vpack.c.bf16 %v3220_v27, %v3220_v27  ;;  %v5281_v21 = vrot.slane %v2972_v38, %v4765_v61 }
 0x318   : > { %3287 = vrot.lane.b32.xlu1 %v5261_v63, %s4411_s9  ;;  %v3238_v37 = vpack.c.bf16 %v3222_v47, %v3222_v47  ;;  %v3209_v43 = vadd.f32 %v3193_v49, %v5074_v56  ;;  %3250 = vst [vmem:[%s5116_s15 + $0x6] sm:$0x3] %v3234_v39  ;;  %v5287_v34 = vcombine.high %v5261_v63, %v5633_v3 }
 0x319   : > { %3262 = vst [vmem:[%s5116_s15 + $0x1e] sm:$0x3] %v3246_v11  ;;  %v5638_v26 = vcombine.high %v5105_v6, %v5124_v46  ;;  %v3223_v48 = vmul.f32 0.088388346, %v3207_v19  ;;  %v3195_v56 = vmul.f32 %v5253_v59, %v3096_v44  ;;  %3252 = vst [vmem:[%s5116_s15 + $0xa] sm:$0x3] %v3236_v16  ;;  %v3069_v6 = vmul.f32 %v4996_v62, %v4872_v36 }
 0x31a   : > { %3254 = vst [vmem:[%s5116_s15 + $0xe] sm:$0x3] %v3238_v37  ;;  %v3225_v61 = vmul.f32 0.088388346, %v3209_v43  ;;  %v3100_v46 = vpop.permute.xlu1 %3099  ;;  %v5313_v28 = vrot.slane %v2603_v15, %v4816_v58  ;;  %v5329_v15 = vrot.slane %v2604_v7, %v4816_v58  ;;  %v5639_v30 = vcombine.low %v5144_v52, %v5168_v18 }
 0x31b   : > { %v5293_v40 = vrot.slane %v5638_v26, %v4816_v58  ;;  %3289 = vrot.lane.b32.xlu0 %v5287_v34, %s4411_s9  ;;  %v3239_v13 = vpack.c.bf16 %v3223_v48, %v3223_v48  ;;  %v3211_v8 = vadd.f32 %v3195_v56, %v3067_v20  ;;  %v3197_v17 = vmul.f32 %v5281_v21, %v3100_v46 }
 0x31c   : > { %v3241_v12 = vpack.c.bf16 %v3225_v61, %v3225_v61  ;;  %v5323_v55 = vcombine.high %v5313_v28, %v5633_v3  ;;  %v5338_v53 = vcombine.high %v5329_v15, %v5633_v3  ;;  %v5344_v57 = vrot.slane %v5639_v30, %v4816_v58 }
 0x31d   : > { %3291 = vrot.lane.b32.xlu1 %v5293_v40, %s4411_s9  ;;  %v5306_v32 = vcombine.high %v5293_v40, %v5633_v3  ;;  %3255 = vst [vmem:[%s5116_s15 + $0x10] sm:$0x3] %v3239_v13  ;;  %v3227_v25 = vmul.f32 0.088388346, %v3211_v8  ;;  %v3213_v54 = vadd.f32 %v3197_v17, %v3069_v6  ;;  %v5640_v45 = vcombine.high %v5144_v52, %v5168_v18 }
 0x31e   : > { %3257 = vst [vmem:[%s5116_s15 + $0x14] sm:$0x3] %v3241_v12  ;;  %v5353_v7 = vcombine.high %v5344_v57, %v5633_v3 }
 0x31f   : > { %3293 = vrot.lane.b32.xlu0 %v5306_v32, %s4411_s9  ;;  %v3243_v36 = vpack.c.bf16 %v3227_v25, %v3227_v25  ;;  %v3229_v38 = vmul.f32 0.088388346, %v3213_v54  ;;  %v5359_v27 = vrot.slane %v5640_v45, %v4816_v58 }
 0x321   : > { %3295 = vrot.lane.b32.xlu1 %v5313_v28, %s4411_s9  ;;  %3259 = vst [vmem:[%s5116_s15 + $0x18] sm:$0x3] %v3243_v36  ;;  %v3245_v41 = vpack.c.bf16 %v3229_v38, %v3229_v38  ;;  %v5367_v47 = vcombine.high %v5359_v27, %v5633_v3 }
 0x323   : > { %3297 = vrot.lane.b32.xlu0 %v5323_v55, %s4411_s9  ;;  %3261 = vst [vmem:[%s5116_s15 + $0x1c] sm:$0x3] %v3245_v41 }
 0x325   : > { %3299 = vrot.lane.b32.xlu1 %v5329_v15, %s4411_s9 }
 0x327   : > { %3301 = vrot.lane.b32.xlu0 %v5338_v53, %s4411_s9 }
 0x329   : > { %3303 = vrot.lane.b32.xlu1 %v5344_v57, %s4411_s9 }
 0x32b   : > { %3305 = vrot.lane.b32.xlu0 %v5353_v7, %s4411_s9 }
 0x32d   : > { %3307 = vrot.lane.b32.xlu1 %v5359_v27, %s4411_s9 }
 0x32f   : > { %3309 = vrot.lane.b32.xlu0 %v5367_v47, %s4411_s9 }
 0x330   : > { %4261 = shalt.err (!%p4258_p9)
}
 0x331   : > { %s4262_s9 = scalar_lea.hbm %s5374_s19, 512  ;;  %s4266_s16 = scalar_lea.hbm %s5572_s5, 1024 }
 0x332   : > { %p4263_p3 = scmp.ne.s32.totalorder %s5374_s19, %s4262_s9  ;;  %p4267_p11 = scmp.lt.u32.totalorder %s5374_s19, %s5572_s5 }
 0x333   : > { %p4268_p2 = scmp.lt.u32.totalorder %s4266_s16, %s4262_s9  ;;  %p4270_p4 = scmp.lt.u32.totalorder %s4262_s9, %s5374_s19 }
 0x334   : > { %p4264_p7 = pnand %p4263_p3, %p4633_p6 }
 0x335   : > { %p4269_p1 = por %p4268_p2, %p4267_p11 }
 0x336   : > { %p4265_p12 = pneg %p4264_p7 }
 0x337   : > { %p4271_p8 = por %p4270_p4, %p4269_p1 }
 0x339   : > { %p4272_p0 = pnand %p4271_p8, %p4265_p12 }
 0x33b   : > { %4275 = shalt.err (!%p4272_p0)
}
 0x33c   : > { %s4415_s20 = smov 32   ;;  %s4416_s17 = smov 2   ;;  %v3263_v3 = vmul.f32 %v4941_v24, %v5198_v35  ;;  %v3264_v11 = vmul.f32 %v4959_v14, %v5223_v2  ;;  %v3265_v24 = vmul.f32 %v4935_v22, %v5232_v29  ;;  %v5642_v43 = vld [vmem:[#allocation26_spill] sm:$0xff]  ;;  %v5643_v56 = vld [vmem:[#allocation21_spill] sm:$0xff]  ;;  %v5646_v46 = vld [vmem:[#allocation23_spill] sm:$0xff] }
 0x33d   : > { %3990 = dma.vmem_to_hbm [thread:$0]  (%p4633_p6), %s5376_s10, 512, %s5374_s19, %s3408_s18, %s4415_s20, %s4415_s20, %s4416_s17   ;;  %v3266_v44 = vmul.f32 %v5642_v43, %v5268_v5  ;;  %v3267_v61 = vmul.f32 %v5643_v56, %v5261_v63  ;;  %v5644_v2 = vld [vmem:[#allocation33_spill] sm:$0xff]  ;;  %v5645_v5 = vld [vmem:[#allocation28_spill] sm:$0xff]  ;;  %v3269_v25 = vmul.f32 %v5646_v46, %v5293_v40  ;;  %v5648_v40 = vld [vmem:[#allocation30_spill] sm:$0xff] }
 0x33e   : > { %s5409_s11 = scalar_lea.vmem [#allocation12], %s3683_s22  ;;  %v3268_v6 = vmul.f32 %v5645_v5, %v5287_v34  ;;  %v5647_v30 = vld [vmem:[#allocation29_spill] sm:$0xff]  ;;  %s3412_s23 = sand.u32 1, %s4492_s30  }
 0x33f   : > { %v3270_v45 = vmul.f32 %v5647_v30, %v5306_v32  ;;  %v5649_v32 = vld [vmem:[#allocation22_spill] sm:$0xff]  ;;  %s3954_s22 = sshll.u32 %s4390_s27, 8  ;;  %s3451_s10 = sshll.u32 %s5409_s11, 4  ;;  %s5480_s10 = int_to_ptr.vmem [resolvable:$true] %s3451_s10 }
 0x340   : > { %s3469_s19 = sshll.u32 %s5163_s8, 4  ;;  %s5478_s15 = scalar_lea.hbm %s5573_s6, %s3954_s22  ;;  %s5487_s19 = int_to_ptr.vmem [resolvable:$true] %s3469_s19 }
 0x341   : > { %s5485_s27 = scalar_lea.hbm %s5574_s7, %s3954_s22  ;;  %s5490_s8 = scalar_lea.sflag [#allocation13], %s3412_s23 }
 0x342   : > { %s4276_s16 = scalar_lea.vmem %s5480_s10, 256  ;;  %s4417_s14 = smov [#allocation12]  }
 0x343   : > { %p4277_p5 = scmp.ne.s32.totalorder %s5480_s10, %s4276_s16  ;;  %s4280_s1 = sshll.u32 %s4417_s14, 4  ;;  %s4281_s1 = int_to_ptr.vmem [resolvable:$false] %s4280_s1 }
 0x344   : > { %s4282_s20 = scalar_lea.vmem %s4281_s1, 512  ;;  %p4283_p9 = scmp.lt.s32.totalorder %s5480_s10, %s4281_s1 }
 0x345   : > { %p4278_p10 = pnand %p4277_p5, %p4633_p6  ;;  %p4284_p3 = scmp.lt.s32.totalorder %s4282_s20, %s4276_s16 }
 0x347   : > { %p4279_p13 = pneg %p4278_p10  ;;  %p4285_p7 = por %p4284_p3, %p4283_p9 }
 0x349   : > { %p4286_p12 = pnand %p4285_p7, %p4279_p13 }
 0x37d   : > { %v3280_v58 = vpop.permute.xlu1 %3279 }
 0x37e   : > { %v3311_v52 = vmul.f32 %v3280_v58, %v4993_v60  ;;  %v5641_v60 = vld [vmem:[#allocation32_spill] sm:$0xff] }
 0x380   : > { %v3327_v18 = vadd.f32 %v3311_v52, %v3263_v3  ;;  %v3271_v3 = vmul.f32 %v5648_v40, %v5313_v28 }
 0x382   : > { %v3343_v49 = vpack.c.bf16 %v3327_v18, %v3327_v18 }
 0x383   : > { %v3282_v20 = vpop.permute.xlu0 %3281 }
 0x384   : > { %3359 = vst [vmem:[%s5409_s11] sm:$0x1] %v3343_v49  ;;  %v3312_v19 = vmul.f32 %v3282_v20, %v5064_v42 }
 0x386   : > { %v3284_v39 = vpop.permute.xlu1 %3283  ;;  %v3328_v16 = vadd.f32 %v3312_v19, %v3264_v11  ;;  %v3272_v11 = vmul.f32 %v5649_v32, %v5323_v55  ;;  %v5650_v19 = vld [vmem:[#allocation31_spill] sm:$0xff] }
 0x387   : > { %v3313_v35 = vmul.f32 %v3284_v39, %v5641_v60 }
 0x388   : > { %v3344_v13 = vpack.c.bf16 %v3328_v16, %v3328_v16  ;;  %v5651_v16 = vld [vmem:[#allocation34_spill] sm:$0xff] }
 0x389   : > { %v3329_v37 = vadd.f32 %v3313_v35, %v3265_v24  ;;  %v3286_v26 = vpop.permute.xlu0 %3285  ;;  %v3273_v24 = vmul.f32 %v5650_v19, %v5329_v15  ;;  %v3275_v15 = vmul.f32 %v4987_v9, %v5344_v57  ;;  %v3277_v9 = vmul.f32 %v4996_v62, %v5359_v27 }
 0x38a   : > { %v3288_v48 = vpop.permute.xlu1 %3287  ;;  %v3314_v42 = vmul.f32 %v3286_v26, %v5070_v4  ;;  %3360 = vst [vmem:[%s5409_s11 + $0x1] sm:$0x1] %v3344_v13 }
 0x38b   : > { %v3345_v14 = vpack.c.bf16 %v3329_v37, %v3329_v37  ;;  %v3315_v22 = vmul.f32 %v3288_v48, %v5644_v2 }
 0x38c   : > { %v3330_v29 = vadd.f32 %v3314_v42, %v3266_v44  ;;  %v5652_v44 = vld [vmem:[#allocation24_spill] sm:$0xff] }
 0x38d   : > { %3361 = vst [vmem:[%s5409_s11 + $0x2] sm:$0x1] %v3345_v14  ;;  %v3331_v8 = vadd.f32 %v3315_v22, %v3267_v61  ;;  %v3290_v12 = vpop.permute.xlu0 %3289  ;;  %v3274_v26 = vmul.f32 %v5652_v44, %v5338_v53  ;;  %v5653_v53 = vld [vmem:[#allocation25_spill] sm:$0xff] }
 0x38e   : > { %v3346_v17 = vpack.c.bf16 %v3330_v29, %v3330_v29  ;;  %v3316_v4 = vmul.f32 %v3290_v12, %v5081_v31  ;;  %v3276_v22 = vmul.f32 %v5653_v53, %v5353_v7 }
 0x38f   : > { %v3292_v63 = vpop.permute.xlu1 %3291  ;;  %v3347_v36 = vpack.c.bf16 %v3331_v8, %v3331_v8 }
 0x390   : > { %v3317_v54 = vmul.f32 %v3292_v63, %v5032_v50  ;;  %3362 = vst [vmem:[%s5409_s11 + $0x3] sm:$0x1] %v3346_v17  ;;  %v3332_v38 = vadd.f32 %v3316_v4, %v3268_v6  ;;  %v5654_v6 = vld [vmem:[#allocation27_spill] sm:$0xff] }
 0x391   : > { %3363 = vst [vmem:[%s5409_s11 + $0x4] sm:$0x1] %v3347_v36  ;;  %v3294_v34 = vpop.permute.xlu0 %3293  ;;  %v3278_v46 = vmul.f32 %v5654_v6, %v5367_v47 }
 0x392   : > { %v3333_v41 = vadd.f32 %v3317_v54, %v3269_v25  ;;  %v3348_v52 = vpack.c.bf16 %v3332_v38, %v3332_v38  ;;  %v3318_v31 = vmul.f32 %v3294_v34, %v5084_v0 }
 0x393   : > { %v3296_v58 = vpop.permute.xlu1 %3295 }
 0x394   : > { %v3349_v18 = vpack.c.bf16 %v3333_v41, %v3333_v41  ;;  %v3319_v50 = vmul.f32 %v3296_v58, %v5088_v1  ;;  %3364 = vst [vmem:[%s5409_s11 + $0x5] sm:$0x1] %v3348_v52  ;;  %v3334_v49 = vadd.f32 %v3318_v31, %v3270_v45 }
 0x395   : > { %v3298_v39 = vpop.permute.xlu0 %3297 }
 0x396   : > { %3365 = vst [vmem:[%s5409_s11 + $0x6] sm:$0x1] %v3349_v18  ;;  %v3335_v20 = vadd.f32 %v3319_v50, %v3271_v3  ;;  %v3350_v60 = vpack.c.bf16 %v3334_v49, %v3334_v49  ;;  %v3320_v0 = vmul.f32 %v3298_v39, %v5651_v16 }
 0x397   : > { %v3300_v28 = vpop.permute.xlu1 %3299 }
 0x398   : > { %v3351_v35 = vpack.c.bf16 %v3335_v20, %v3335_v20  ;;  %v3321_v1 = vmul.f32 %v3300_v28, %v5243_v33  ;;  %3366 = vst [vmem:[%s5409_s11 + $0x7] sm:$0x1] %v3350_v60  ;;  %v3336_v37 = vadd.f32 %v3320_v0, %v3272_v11 }
 0x399   : > { %v3302_v55 = vpop.permute.xlu0 %3301 }
 0x39a   : > { %3367 = vst [vmem:[%s5409_s11 + $0x8] sm:$0x1] %v3351_v35  ;;  %v3337_v43 = vadd.f32 %v3321_v1, %v3273_v24  ;;  %v3352_v56 = vpack.c.bf16 %v3336_v37, %v3336_v37  ;;  %v3322_v13 = vmul.f32 %v3302_v55, %v5035_v23 }
 0x39b   : > { %v3304_v48 = vpop.permute.xlu1 %3303 }
 0x39c   : > { %v3353_v61 = vpack.c.bf16 %v3337_v43, %v3337_v43  ;;  %v3323_v33 = vmul.f32 %v3304_v48, %v5253_v59  ;;  %3368 = vst [vmem:[%s5409_s11 + $0x9] sm:$0x1] %v3352_v56  ;;  %v3338_v14 = vadd.f32 %v3322_v13, %v3274_v26 }
 0x39d   : > { %v3306_v2 = vpop.permute.xlu0 %3305 }
 0x39e   : > { %3369 = vst [vmem:[%s5409_s11 + $0xa] sm:$0x1] %v3353_v61  ;;  %v3339_v42 = vadd.f32 %v3323_v33, %v3275_v15  ;;  %v3354_v29 = vpack.c.bf16 %v3338_v14, %v3338_v14  ;;  %v3324_v59 = vmul.f32 %v3306_v2, %v5067_v51 }
 0x39f   : > { %v3308_v57 = vpop.permute.xlu1 %3307 }
 0x3a0   : > { %v3355_v23 = vpack.c.bf16 %v3339_v42, %v3339_v42  ;;  %v3325_v8 = vmul.f32 %v3308_v57, %v5281_v21  ;;  %3370 = vst [vmem:[%s5409_s11 + $0xb] sm:$0x1] %v3354_v29  ;;  %v3340_v12 = vadd.f32 %v3324_v59, %v3276_v22 }
 0x3a1   : > { %v3310_v7 = vpop.permute.xlu0 %3309 }
 0x3a2   : > { %3371 = vst [vmem:[%s5409_s11 + $0xc] sm:$0x1] %v3355_v23  ;;  %v3341_v5 = vadd.f32 %v3325_v8, %v3277_v9  ;;  %v3356_v62 = vpack.c.bf16 %v3340_v12, %v3340_v12  ;;  %v3326_v25 = vmul.f32 %v3310_v7, %v5078_v10 }
 0x3a4   : > { %v3357_v27 = vpack.c.bf16 %v3341_v5, %v3341_v5  ;;  %3372 = vst [vmem:[%s5409_s11 + $0xd] sm:$0x1] %v3356_v62  ;;  %v3342_v51 = vadd.f32 %v3326_v25, %v3278_v46 }
 0x3a6   : > { %3373 = vst [vmem:[%s5409_s11 + $0xe] sm:$0x1] %v3357_v27  ;;  %v3358_v21 = vpack.c.bf16 %v3342_v51, %v3342_v51 }
 0x3a8   : > { %3374 = vst [vmem:[%s5409_s11 + $0xf] sm:$0x1] %v3358_v21 }
 0x3a9   : > { %4289 = shalt.err (!%p4286_p12)
}
 0x3aa   : > { %s4290_s17 = scalar_lea.hbm %s5478_s15, 256  ;;  %s4294_s22 = scalar_lea.hbm %s5573_s6, 512 }
 0x3ab   : > { %p4291_p11 = scmp.ne.s32.totalorder %s5478_s15, %s4290_s17  ;;  %p4295_p4 = scmp.lt.u32.totalorder %s5478_s15, %s5573_s6 }
 0x3ac   : > { %p4296_p8 = scmp.lt.u32.totalorder %s4294_s22, %s4290_s17  ;;  %p4298_p5 = scmp.lt.u32.totalorder %s4290_s17, %s5478_s15 }
 0x3ad   : > { %p4292_p2 = pnand %p4291_p11, %p4633_p6 }
 0x3ae   : > { %p4297_p0 = por %p4296_p8, %p4295_p4 }
 0x3af   : > { %p4293_p1 = pneg %p4292_p2 }
 0x3b0   : > { %p4299_p10 = por %p4298_p5, %p4297_p0 }
 0x3b2   : > { %p4300_p13 = pnand %p4299_p10, %p4293_p1 }
 0x3b4   : > { %4303 = shalt.err (!%p4300_p13)
}
 0x3b5   : > { %s4418_s30 = smov 16   ;;  %s4419_s3 = smov 1  }
 0x3b6   : > { %3991 = dma.vmem_to_hbm [thread:$0]  (%p4633_p6), %s5480_s10, 256, %s5478_s15, %s5490_s8, %s4418_s30, %s4418_s30, %s4419_s3  }
 0x3b7   : > { %s4304_s16 = scalar_lea.vmem %s5487_s19, 256  ;;  %s4420_s14 = smov [#allocation14]  }
 0x3b8   : > { %p4305_p9 = scmp.ne.s32.totalorder %s5487_s19, %s4304_s16  ;;  %s4308_s1 = sshll.u32 %s4420_s14, 4  ;;  %s4309_s1 = int_to_ptr.vmem [resolvable:$false] %s4308_s1 }
 0x3b9   : > { %s4310_s20 = scalar_lea.vmem %s4309_s1, 512  ;;  %p4311_p12 = scmp.lt.s32.totalorder %s5487_s19, %s4309_s1 }
 0x3ba   : > { %p4306_p3 = pnand %p4305_p9, %p4633_p6  ;;  %p4312_p11 = scmp.lt.s32.totalorder %s4310_s20, %s4304_s16 }
 0x3bc   : > { %p4307_p7 = pneg %p4306_p3  ;;  %p4313_p2 = por %p4312_p11, %p4311_p12 }
 0x3be   : > { %p4314_p1 = pnand %p4313_p2, %p4307_p7 }
 0x3c0   : > { %4317 = shalt.err (!%p4314_p1)
}
 0x3c1   : > { %s4318_s10 = scalar_lea.hbm %s5485_s27, 256  ;;  %s4322_s11 = scalar_lea.hbm %s5574_s7, 512 }
 0x3c2   : > { %p4319_p4 = scmp.ne.s32.totalorder %s5485_s27, %s4318_s10  ;;  %p4323_p5 = scmp.lt.u32.totalorder %s5485_s27, %s5574_s7 }
 0x3c3   : > { %p4324_p10 = scmp.lt.u32.totalorder %s4322_s11, %s4318_s10  ;;  %p4326_p9 = scmp.lt.u32.totalorder %s4318_s10, %s5485_s27 }
 0x3c4   : > { %p4320_p8 = pnand %p4319_p4, %p4633_p6 }
 0x3c5   : > { %p4325_p13 = por %p4324_p10, %p4323_p5 }
 0x3c6   : > { %p4321_p0 = pneg %p4320_p8 }
 0x3c7   : > { %p4327_p3 = por %p4326_p9, %p4325_p13 }
 0x3c9   : > { %p4328_p7 = pnand %p4327_p3, %p4321_p0 }
 0x3cb   : > { %4331 = shalt.err (!%p4328_p7)
}
 0x3cc   : > { %3992 = dma.vmem_to_hbm [thread:$0]  (%p4633_p6), %s5487_s19, 256, %s5485_s27, %s5490_s8, %s4418_s30, %s4418_s30, %s4419_s3  }
 0x3cd PF: > { %s5655_s18 = sld [smem:[#allocation20_spill]]  ;;  %s3484_s9 = sand.u32 1, %s4378_s24  }
 0x3ce   : > { %p5657_p11 = scmp.ge.s32.totalorder %s4398_s29, 2  ;;  %s3485_s16 = scalar_lea.sflag [#allocation4], %s3484_s9 }
 0x3d3   : > { %p5656_p12 = scmp.ne.s32.totalorder %s5655_s18, 0 }
 0x3d5   : > { %p4014_p2 = pnand %p5657_p11, %p5656_p12 }
 0x3d7   : > { %4369 = dma.done.wait (!%p4014_p2), %s3485_s16, 512  }
 0x3d8   : > { %4371 = vsyncadd (!%p4014_p2), %s3485_s16, 4294966784  ;;  %s5658_s21 = sadd.s32 4294967294, %s4398_s29  }
 0x3d9   : > { %s3493_s14 = sand.u32 1, %s5658_s21  }
 0x3da   : > { %s3494_s1 = scalar_lea.sflag [#allocation13], %s3493_s14 }
 0x3db   : > { %4373 = dma.done.wait (!%p4014_p2), %s3494_s1, 512  }
 0x3dc   : > { %4375 = vsyncadd (!%p4014_p2), %s3494_s1, 4294966784  ;;  %s29_s29 = sadd.s32 1, %s4398_s29   ;;  %s5659_s24 = smov %s4382_s25 }
 0x3dd   : > { %p26_p6 = scmp.ge.s32.totalorder %s29_s29, 4   ;;  %s5660_s25 = smov %s4386_s26 }
 0x3de   : > { %s5661_s26 = smov %s4642_s13  ;;  %s5662_s27 = smov %s4394_s28 }
 0x3df   : > { %s5663_s28 = smov %s5665_s12  ;;  %28 = sbr.rel (!%p26_p6) target bundleno = 13 (0xd), region = 135 }
 0x3e6   :  { %3508 = vsyncpa [#allocation3], 1 }
 0x3e7   :  { %3510 = vsyncpa [#allocation3 + $0x1], 1 }
 0x3e8   :  { %3511 = vsyncpa [#allocation6], 1 }
 0x3e9   :  { %3512 = vsyncpa [#allocation9], 1 }
 0x3ea   :  { %3513 = vsyncpa [#allocation4], 1 }
 0x3eb   :  { %3515 = vsyncpa [#allocation4 + $0x1], 1 }
 0x3ec   :  { %3516 = vsyncpa [#allocation13], 1 }
 0x3ed   :  { %3518 = vsyncpa [#allocation13 + $0x1], 1 }

</bundles_post_ra>
